<compile_context>
chip_gen: v5e
topology: v5e:2x2
jax: 0.10.0
libtpu: 0.0.40
codegen_flags: <defaults>
</compile_context>

<pallas_src>
import functools

import jax
import jax.numpy as jnp
from jax import lax
from jax.experimental import pallas as pl
from jax.experimental.pallas import tpu as pltpu


_VMEM_LIMIT = 32 * 1024 * 1024  # safe on v5e/v6e (128 MiB phys) and v7x (64 MiB phys)


# -----------------------------------------------------------------------------
# Block-size helpers (always return a divisor of n, or n itself).
# -----------------------------------------------------------------------------
def _pick_block(n, candidates=(512, 256, 128, 64, 32, 16, 8)):
    for c in candidates:
        if n % c == 0:
            return c
    return n


def _pick_lane_block(n, candidates=(1024, 768, 512, 384, 256, 128)):
    for c in candidates:
        if n % c == 0:
            return c
    return n


def _pick_time_block(T, Bs, H, mm_bytes, budget=12 * 1024 * 1024):
    """Largest Tb in (16,8,4,2,1) dividing T whose recurrence working set fits
    the VMEM budget.  Cap at 16 so the unrolled inner loop stays small."""
    fixed = (2 * H * 3 * H * mm_bytes        # whh3 (double-buffered by default)
             + 2 * Bs * 3 * H * 4            # add3
             + 4 * Bs * H * 4                # h0 + hT
             + 2 * H * 4                     # b_hn
             + Bs * H * 4)                   # h scratch
    for tb in (16, 8, 4, 2, 1):
        if T % tb != 0:
            continue
        per = 2 * tb * Bs * 3 * H * mm_bytes + 2 * tb * Bs * H * mm_bytes
        if fixed + per <= budget:
            return tb
    return 1


# -----------------------------------------------------------------------------
# Grid-parallel input projection:  GI = x @ W3   (x: (N, IN), W3: (IN, 3H)).
# Single fused dot per tile (one MXU weight push); bias is NOT added here (it is
# folded into the per-batch add term consumed by the recurrence kernel).
# -----------------------------------------------------------------------------
def input_proj_kernel(x_ref, w_ref, o_ref):
    x = x_ref[...].astype(w_ref.dtype)
    o_ref[...] = jnp.dot(x, w_ref[...],
                         preferred_element_type=jnp.float32).astype(o_ref.dtype)


def gru_input_proj(x2d, w3, out_dtype):
    N, IN = x2d.shape
    H3 = w3.shape[-1]
    tm = _pick_block(N)
    tn = _pick_lane_block(H3)
    grid = (N // tm, H3 // tn)
    return pl.pallas_call(
        input_proj_kernel,
        out_shape=jax.ShapeDtypeStruct((N, H3), out_dtype),
        grid_spec=pltpu.PrefetchScalarGridSpec(
            num_scalar_prefetch=0,
            grid=grid,
            in_specs=[pl.BlockSpec((tm, IN), lambda i, j: (i, 0)),
                      pl.BlockSpec((IN, tn), lambda i, j: (0, j))],
            out_specs=pl.BlockSpec((tm, tn), lambda i, j: (i, j)),
        ),
        compiler_params=pltpu.CompilerParams(
            dimension_semantics=("parallel", "parallel"),
            vmem_limit_bytes=_VMEM_LIMIT),
    )(x2d, w3)


# -----------------------------------------------------------------------------
# Sequential GRU recurrence over time, time axis blocked, optional batch-parallel
# leading grid axis.  Per timestep only ONE (B,H)@(H,3H) recurrent matmul runs.
#   gi = GI[t] + add3                       (add3 = ctx proj + biases, per batch)
#   gh = h @ Whh3                           (gate order r|z|n along lanes)
#   r  = sigmoid(gi_r + gh_r)
#   z  = sigmoid(gi_z + gh_z)
#   n  = tanh   (gi_n + r * (gh_n + b_hn))
#   h' = (1 - z) * n + z * h
# -----------------------------------------------------------------------------
def gru_recurrence_kernel(gi_ref, add3_ref, h0_ref, whh3_ref, bhn_ref,
                          y_ref, hT_ref, h_scr):
    t_blk = pl.program_id(1)
    Tb = gi_ref.shape[0]
    H = h0_ref.shape[-1]

    @pl.when(t_blk == 0)
    def _():
        h_scr[...] = h0_ref[...]

    whh3 = whh3_ref[...]
    add3 = add3_ref[...]
    bhn = bhn_ref[...]

    def step(t, h):
        gi = gi_ref[t].astype(jnp.float32) + add3
        gh = jnp.dot(h.astype(whh3.dtype), whh3,
                     preferred_element_type=jnp.float32)
        r = jax.nn.sigmoid(gi[:, 0:H] + gh[:, 0:H])
        z = jax.nn.sigmoid(gi[:, H:2 * H] + gh[:, H:2 * H])
        n = jnp.tanh(gi[:, 2 * H:3 * H] + r * (gh[:, 2 * H:3 * H] + bhn))
        h_new = (1.0 - z) * n + z * h
        y_ref[t] = h_new.astype(y_ref.dtype)
        return h_new

    h_final = lax.fori_loop(0, Tb, step, h_scr[...], unroll=True)
    h_scr[...] = h_final

    @pl.when(t_blk == pl.num_programs(1) - 1)
    def _():
        hT_ref[...] = h_final


def gru_recurrence(gi3, add3, h0, whh3, b_hn, mm_dtype):
    T, B, H3 = gi3.shape
    H = H3 // 3
    mm_bytes = jnp.dtype(mm_dtype).itemsize

    # Batch-parallel split across TensorCores (v7x megacore); requires sublane
    # alignment of the per-core batch slab.  Inert for small B / 1-TC chips.
    nb = 2 if (B % 2 == 0 and (B // 2) % 8 == 0) else 1
    Bs = B // nb
    Tb = _pick_time_block(T, Bs, H, mm_bytes)
    grid = (nb, T // Tb)

    gi_spec = pl.BlockSpec((Tb, Bs, H3), lambda b, t: (t, b, 0))
    y_spec = pl.BlockSpec((Tb, Bs, H), lambda b, t: (t, b, 0))
    add_spec = pl.BlockSpec((Bs, H3), lambda b, t: (b, 0))
    h_spec = pl.BlockSpec((Bs, H), lambda b, t: (b, 0))
    w_spec = pl.BlockSpec((H, H3), lambda b, t: (0, 0))
    bhn_spec = pl.BlockSpec((1, H), lambda b, t: (0, 0))

    return pl.pallas_call(
        gru_recurrence_kernel,
        out_shape=(jax.ShapeDtypeStruct((T, B, H), mm_dtype),
                   jax.ShapeDtypeStruct((B, H), jnp.float32)),
        grid_spec=pltpu.PrefetchScalarGridSpec(
            num_scalar_prefetch=0,
            grid=grid,
            in_specs=[gi_spec, add_spec, h_spec, w_spec, bhn_spec],
            out_specs=[y_spec, h_spec],
            scratch_shapes=[pltpu.VMEM((Bs, H), jnp.float32)],
        ),
        compiler_params=pltpu.CompilerParams(
            # batch axis is embarrassingly parallel; time axis is a true recurrence
            dimension_semantics=("parallel", "arbitrary"),
            vmem_limit_bytes=_VMEM_LIMIT),
    )(gi3, add3, h0, whh3, b_hn)


# -----------------------------------------------------------------------------
# Dense kernel: out = x @ W + b, tiled over (rows, cols); rows outer so the
# weight panel is streamed as few times as possible.  Also reused for the
# once-per-forward context projection (layer 0).
# -----------------------------------------------------------------------------
def dense_kernel(x_ref, w_ref, b_ref, o_ref):
    x = x_ref[...].astype(w_ref.dtype)
    o_ref[...] = (jnp.dot(x, w_ref[...],
                          preferred_element_type=jnp.float32) + b_ref[...])


def dense(x2d, w_t, b2d):
    N, H = x2d.shape
    V = w_t.shape[-1]
    tm = _pick_block(N)
    tn = _pick_lane_block(V)
    grid = (N // tm, V // tn)
    return pl.pallas_call(
        dense_kernel,
        out_shape=jax.ShapeDtypeStruct((N, V), jnp.float32),
        grid_spec=pltpu.PrefetchScalarGridSpec(
            num_scalar_prefetch=0,
            grid=grid,
            in_specs=[pl.BlockSpec((tm, H), lambda i, j: (i, 0)),
                      pl.BlockSpec((H, tn), lambda i, j: (0, j)),
                      pl.BlockSpec((1, tn), lambda i, j: (0, j))],
            out_specs=pl.BlockSpec((tm, tn), lambda i, j: (i, j)),
        ),
        compiler_params=pltpu.CompilerParams(
            dimension_semantics=("parallel", "parallel"),
            vmem_limit_bytes=_VMEM_LIMIT),
    )(x2d, w_t, b2d)


# -----------------------------------------------------------------------------
# Parameter construction (PyTorch-style layout: gate order [r, z, n]).
# -----------------------------------------------------------------------------
def init_params(key, vocab_size, embed_size, num_hiddens, num_layers):
    keys = jax.random.split(key, 3 + 4 * num_layers)
    k = 1.0 / jnp.sqrt(num_hiddens)
    params = {
        "embedding": jax.random.normal(keys[0], (vocab_size, embed_size),
                                       jnp.float32),
        "dense_wT": jax.random.uniform(keys[1], (num_hiddens, vocab_size),
                                       jnp.float32, -k, k),
        "dense_b": jax.random.uniform(keys[2], (1, vocab_size),
                                      jnp.float32, -k, k),
        "gru": [],
    }
    for layer in range(num_layers):
        in_size = embed_size + num_hiddens if layer == 0 else num_hiddens
        ka, kb, kc, kd = keys[3 + 4 * layer: 3 + 4 * layer + 4]
        params["gru"].append({
            "wih_t": jax.random.uniform(ka, (in_size, 3 * num_hiddens),
                                        jnp.float32, -k, k),
            "whh_t": jax.random.uniform(kb, (num_hiddens, 3 * num_hiddens),
                                        jnp.float32, -k, k),
            "bih": jax.random.uniform(kc, (1, 3 * num_hiddens),
                                      jnp.float32, -k, k),
            "bhh": jax.random.uniform(kd, (1, 3 * num_hiddens),
                                      jnp.float32, -k, k),
        })
    return params


def prepare_params(params, embed_size, mm_dtype):
    """Split PyTorch-layout GRU weights into fused (IN,3H)/(H,3H) panels, cast
    matmul panels to mm_dtype, and pre-combine biases into one (1,3H) add term
    (b_ir+b_hr | b_iz+b_hz | b_in); b_hn stays separate (PyTorch n-gate)."""
    E = embed_size
    prepared = []
    for layer, p in enumerate(params["gru"]):
        wih_t, whh_t = p["wih_t"], p["whh_t"]
        bih, bhh = p["bih"], p["bhh"]
        H = whh_t.shape[0]
        d = {
            "whh3_t": whh_t.astype(mm_dtype),                       # (H, 3H)
            "b_hn": bhh[:, 2 * H:3 * H],                            # (1, H) f32
            "b3": jnp.concatenate([bih[:, 0:H] + bhh[:, 0:H],
                                   bih[:, H:2 * H] + bhh[:, H:2 * H],
                                   bih[:, 2 * H:3 * H]], axis=1),   # (1, 3H) f32
        }
        if layer == 0:
            # layer-0 input is concat([emb, context]): split W_ih rows accordingly
            d["wih_emb3_t"] = wih_t[:E, :].astype(mm_dtype)         # (E, 3H)
            d["wih_ctx3_t"] = wih_t[E:, :].astype(mm_dtype)         # (H, 3H)
        else:
            d["wih3_t"] = wih_t.astype(mm_dtype)                    # (H, 3H)
        prepared.append(d)
    return prepared


# -----------------------------------------------------------------------------
# Seq2SeqDecoder.forward
#   X:     (batch, seq) int32 token ids
#   state: (num_layers, batch, num_hiddens) f32   (== init_state(enc_outputs))
# Returns (output: (batch, seq, vocab), new_state: (num_layers, batch, hidden))
# dropout=0 -> no-op between GRU layers.
# -----------------------------------------------------------------------------
def seq2seq_decoder_forward(params, X, state, mm_dtype=jnp.bfloat16):
    E = params["embedding"].shape[1]
    prep = prepare_params(params, E, mm_dtype)

    # TODO(synk): embedding gather stays in XLA (jnp.take); a Pallas DMA-gather is
    # not worthwhile at these sizes.  Gather time-major so no (B,T,E)->(T,B,E)
    # transpose is needed.
    Xp = jnp.take(params["embedding"], X.T, axis=0)          # (T, B, E)
    T, B, _ = Xp.shape
    H = state.shape[-1]
    context = state[-1]                                       # (B, H), same for all t

    x = None
    new_state = []
    for layer, p in enumerate(prep):
        if layer == 0:
            # Context projection + all biases computed ONCE -> per-batch add term
            # consumed inside the recurrence kernel (no XLA pass over (T,B,3H)).
            add3 = dense(context, p["wih_ctx3_t"], p["b3"])   # (B, 3H) f32
            gi3 = gru_input_proj(Xp.reshape(T * B, E),
                                 p["wih_emb3_t"], mm_dtype)
        else:
            add3 = jnp.broadcast_to(p["b3"], (B, 3 * H))      # (B, 3H) f32
            gi3 = gru_input_proj(x.reshape(T * B, H),
                                 p["wih3_t"], mm_dtype)
        gi3 = gi3.reshape(T, B, 3 * H)

        x, hT = gru_recurrence(gi3, add3, state[layer],
                               p["whh3_t"], p["b_hn"], mm_dtype)
        new_state.append(hT)

    new_state = jnp.stack(new_state, axis=0)

    V = params["dense_wT"].shape[-1]
    logits = dense(x.reshape(T * B, H),
                   params["dense_wT"].astype(mm_dtype), params["dense_b"])
    # TODO(synk): emitting logits directly in (B,T,V) via an out-spec index swap
    # (3D in-kernel transpose) is left to XLA for lowering safety.
    output = jnp.transpose(logits.reshape(T, B, V), (1, 0, 2))   # (B, T, V)
    return output, new_state


# -----------------------------------------------------------------------------
# Pure-JAX reference (PyTorch-layout math) for correctness checking.
# -----------------------------------------------------------------------------
def reference_forward(params, X, state):
    emb = jnp.take(params["embedding"], X, axis=0)
    Xp = jnp.transpose(emb, (1, 0, 2))
    T = Xp.shape[0]
    context = jnp.broadcast_to(state[-1], (T,) + state[-1].shape)
    x = jnp.concatenate([Xp, context], axis=2)

    new_state = []
    for layer, p in enumerate(params["gru"]):
        h = state[layer]
        H = h.shape[-1]
        ys = []
        for t in range(T):
            gi = x[t] @ p["wih_t"] + p["bih"]
            gh = h @ p["whh_t"] + p["bhh"]
            r = jax.nn.sigmoid(gi[:, :H] + gh[:, :H])
            z = jax.nn.sigmoid(gi[:, H:2 * H] + gh[:, H:2 * H])
            n = jnp.tanh(gi[:, 2 * H:] + r * gh[:, 2 * H:])
            h = (1.0 - z) * n + z * h
            ys.append(h)
        x = jnp.stack(ys, axis=0)
        new_state.append(h)
    new_state = jnp.stack(new_state, axis=0)
    logits = x @ params["dense_wT"] + params["dense_b"]
    return jnp.transpose(logits, (1, 0, 2)), new_state


if __name__ == "__main__":
    vocab_size, embed_size, num_hiddens, num_layers = 32, 16, 32, 2
    batch, seq = 4, 8

    key = jax.random.PRNGKey(0)
    pkey, xkey, skey = jax.random.split(key, 3)
    params = init_params(pkey, vocab_size, embed_size, num_hiddens, num_layers)

    X = jax.random.randint(xkey, (batch, seq), 0, vocab_size, dtype=jnp.int32)
    # init_state(enc_outputs) == encoder's final hidden state: (L, B, H)
    state = jax.random.normal(skey, (num_layers, batch, num_hiddens),
                              jnp.float32)

    ref_out, ref_state = reference_forward(params, X, state)

    # f32 matmul path: tight numeric check against the reference.
    fwd32 = jax.jit(functools.partial(seq2seq_decoder_forward, params,
                                      mm_dtype=jnp.float32))
    out32, st32 = fwd32(X, state)
    jax.block_until_ready((out32, st32))
    assert out32.shape == (batch, seq, vocab_size)
    assert st32.shape == (num_layers, batch, num_hiddens)
    assert jnp.allclose(out32, ref_out, atol=1e-4, rtol=1e-4)
    assert jnp.allclose(st32, ref_state, atol=1e-4, rtol=1e-4)

    # bf16 matmul path (production setting on v6e/v7x): loose check.
    fwd16 = jax.jit(functools.partial(seq2seq_decoder_forward, params,
                                      mm_dtype=jnp.bfloat16))
    out16, st16 = fwd16(X, state)
    jax.block_until_ready((out16, st16))
    assert jnp.allclose(out16, ref_out, atol=5e-2, rtol=5e-2)
    assert jnp.allclose(st16, ref_state, atol=5e-2, rtol=5e-2)

    print("KERNEL_OK")
</pallas_src>

<mosaic_0001>
module attributes {stable_mosaic.version = 11 : i64} {
  func.func @dense_kernel(%arg0: i32, %arg1: i32, %arg2: memref<4x32xf32, #tpu.memory_space<vmem>>, %arg3: memref<32x96xf32, #tpu.memory_space<vmem>>, %arg4: memref<1x96xf32, #tpu.memory_space<vmem>>, %arg5: memref<4x96xf32, #tpu.memory_space<vmem>>) attributes {dimension_semantics = [#tpu.dimension_semantics<parallel>, #tpu.dimension_semantics<parallel>], iteration_bounds = array<i64: 1, 1>, scalar_prefetch = 0 : i64, scratch_operands = 0 : i64, tpu.core_type = #tpu.core_type<tc>, window_params = [{transform_indices = @transform_0, window_bounds = array<i64: 4, 32>}, {transform_indices = @transform_1, window_bounds = array<i64: 32, 96>}, {transform_indices = @transform_2, window_bounds = array<i64: 1, 96>}, {transform_indices = @transform_3, window_bounds = array<i64: 4, 96>}]} {
    %c0 = arith.constant 0 : index
    %c0_0 = arith.constant 0 : index
    %0 = vector.load %arg2[%c0, %c0_0] : memref<4x32xf32, #tpu.memory_space<vmem>>, vector<4x32xf32>
    %c0_1 = arith.constant 0 : index
    %c0_2 = arith.constant 0 : index
    %1 = vector.load %arg3[%c0_1, %c0_2] : memref<32x96xf32, #tpu.memory_space<vmem>>, vector<32x96xf32>
    %cst = arith.constant dense<0.000000e+00> : vector<4x96xf32>
    %2 = tpu.matmul %0, %1, %cst {dimension_numbers = #tpu.dot_dimension_numbers<[1], [0], [0], [1], [0, 0, 1, 1], [], []>} : vector<4x32xf32>, vector<32x96xf32>, vector<4x96xf32> -> vector<4x96xf32>
    %c0_3 = arith.constant 0 : index
    %c0_4 = arith.constant 0 : index
    %3 = vector.load %arg4[%c0_3, %c0_4] : memref<1x96xf32, #tpu.memory_space<vmem>>, vector<1x96xf32>
    %4 = vector.broadcast %3 : vector<1x96xf32> to vector<4x96xf32>
    %5 = arith.addf %2, %4 : vector<4x96xf32>
    %c0_5 = arith.constant 0 : index
    %c0_6 = arith.constant 0 : index
    %6 = vector.load %arg5[%c0_5, %c0_6] : memref<4x96xf32, #tpu.memory_space<vmem>>, vector<4x96xf32>
    tpu.vector_store %arg5[%c0_5, %c0_6], %5 {strides = array<i32>} : memref<4x96xf32, #tpu.memory_space<vmem>>, vector<4x96xf32>,
    return
  }
  func.func @transform_0(%arg0: i32, %arg1: i32) -> (i32, i32) {
    %c0_i32 = arith.constant 0 : i32
    %c0_i32_0 = arith.constant 0 : i32
    return %arg0, %c0_i32 : i32, i32
  }
  func.func @transform_1(%arg0: i32, %arg1: i32) -> (i32, i32) {
    %c0_i32 = arith.constant 0 : i32
    %c0_i32_0 = arith.constant 0 : i32
    return %c0_i32, %arg1 : i32, i32
  }
  func.func @transform_2(%arg0: i32, %arg1: i32) -> (i32, i32) {
    %c0_i32 = arith.constant 0 : i32
    %c0_i32_0 = arith.constant 0 : i32
    return %c0_i32, %arg1 : i32, i32
  }
  func.func @transform_3(%arg0: i32, %arg1: i32) -> (i32, i32) {
    %c0_i32 = arith.constant 0 : i32
    return %arg0, %arg1 : i32, i32
  }
}

module attributes {stable_mosaic.version = 11 : i64} {
  func.func @input_proj_kernel(%arg0: i32, %arg1: i32, %arg2: memref<32x16xf32, #tpu.memory_space<vmem>>, %arg3: memref<16x96xf32, #tpu.memory_space<vmem>>, %arg4: memref<32x96xf32, #tpu.memory_space<vmem>>) attributes {dimension_semantics = [#tpu.dimension_semantics<parallel>, #tpu.dimension_semantics<parallel>], iteration_bounds = array<i64: 1, 1>, scalar_prefetch = 0 : i64, scratch_operands = 0 : i64, tpu.core_type = #tpu.core_type<tc>, window_params = [{transform_indices = @transform_0, window_bounds = array<i64: 32, 16>}, {transform_indices = @transform_1, window_bounds = array<i64: 16, 96>}, {transform_indices = @transform_2, window_bounds = array<i64: 32, 96>}]} {
    %c0 = arith.constant 0 : index
    %c0_0 = arith.constant 0 : index
    %0 = vector.load %arg2[%c0, %c0_0] : memref<32x16xf32, #tpu.memory_space<vmem>>, vector<32x16xf32>
    %c0_1 = arith.constant 0 : index
    %c0_2 = arith.constant 0 : index
    %1 = vector.load %arg3[%c0_1, %c0_2] : memref<16x96xf32, #tpu.memory_space<vmem>>, vector<16x96xf32>
    %cst = arith.constant dense<0.000000e+00> : vector<32x96xf32>
    %2 = tpu.matmul %0, %1, %cst {dimension_numbers = #tpu.dot_dimension_numbers<[1], [0], [0], [1], [0, 0, 1, 1], [], []>} : vector<32x16xf32>, vector<16x96xf32>, vector<32x96xf32> -> vector<32x96xf32>
    %c0_3 = arith.constant 0 : index
    %c0_4 = arith.constant 0 : index
    %3 = vector.load %arg4[%c0_3, %c0_4] : memref<32x96xf32, #tpu.memory_space<vmem>>, vector<32x96xf32>
    tpu.vector_store %arg4[%c0_3, %c0_4], %2 {strides = array<i32>} : memref<32x96xf32, #tpu.memory_space<vmem>>, vector<32x96xf32>,
    return
  }
  func.func @transform_0(%arg0: i32, %arg1: i32) -> (i32, i32) {
    %c0_i32 = arith.constant 0 : i32
    %c0_i32_0 = arith.constant 0 : i32
    return %arg0, %c0_i32 : i32, i32
  }
  func.func @transform_1(%arg0: i32, %arg1: i32) -> (i32, i32) {
    %c0_i32 = arith.constant 0 : i32
    %c0_i32_0 = arith.constant 0 : i32
    return %c0_i32, %arg1 : i32, i32
  }
  func.func @transform_2(%arg0: i32, %arg1: i32) -> (i32, i32) {
    %c0_i32 = arith.constant 0 : i32
    return %arg0, %arg1 : i32, i32
  }
}

module attributes {stable_mosaic.version = 11 : i64} {
  func.func @gru_recurrence_kernel(%arg0: i32, %arg1: i32, %arg2: memref<8x4x96xf32, #tpu.memory_space<vmem>>, %arg3: memref<4x96xf32, #tpu.memory_space<vmem>>, %arg4: memref<4x32xf32, #tpu.memory_space<vmem>>, %arg5: memref<32x96xf32, #tpu.memory_space<vmem>>, %arg6: memref<1x32xf32, #tpu.memory_space<vmem>>, %arg7: memref<8x4x32xf32, #tpu.memory_space<vmem>>, %arg8: memref<4x32xf32, #tpu.memory_space<vmem>>, %arg9: memref<4x32xf32, #tpu.memory_space<vmem>>) attributes {dimension_semantics = [#tpu.dimension_semantics<parallel>, #tpu.dimension_semantics<arbitrary>], iteration_bounds = array<i64: 1, 1>, scalar_prefetch = 0 : i64, scratch_operands = 1 : i64, tpu.core_type = #tpu.core_type<tc>, window_params = [{transform_indices = @transform_0, window_bounds = array<i64: 8, 4, 96>}, {transform_indices = @transform_1, window_bounds = array<i64: 4, 96>}, {transform_indices = @transform_2, window_bounds = array<i64: 4, 32>}, {pipeline_mode = #tpu.pipeline_mode<synchronous>, transform_indices = @transform_3, window_bounds = array<i64: 32, 96>}, {pipeline_mode = #tpu.pipeline_mode<synchronous>, transform_indices = @transform_4, window_bounds = array<i64: 1, 32>}, {transform_indices = @transform_5, window_bounds = array<i64: 8, 4, 32>}, {transform_indices = @transform_6, window_bounds = array<i64: 4, 32>}]} {
    %c0_i32 = arith.constant 0 : i32
    %0 = arith.cmpi eq, %arg1, %c0_i32 : i32
    %1 = arith.extui %0 : i1 to i32
    %c0_i32_0 = arith.constant 0 : i32
    %2 = arith.cmpi ne, %1, %c0_i32_0 : i32
    scf.if %2 {
      %c0_76 = arith.constant 0 : index
      %c0_77 = arith.constant 0 : index
      %307 = vector.load %arg4[%c0_76, %c0_77] : memref<4x32xf32, #tpu.memory_space<vmem>>, vector<4x32xf32>
      %c0_78 = arith.constant 0 : index
      %c0_79 = arith.constant 0 : index
      %308 = vector.load %arg9[%c0_78, %c0_79] : memref<4x32xf32, #tpu.memory_space<vmem>>, vector<4x32xf32>
      tpu.vector_store %arg9[%c0_78, %c0_79], %307 {strides = array<i32>} : memref<4x32xf32, #tpu.memory_space<vmem>>, vector<4x32xf32>,
    } else {
    }
    %c0 = arith.constant 0 : index
    %c0_1 = arith.constant 0 : index
    %3 = vector.load %arg5[%c0, %c0_1] : memref<32x96xf32, #tpu.memory_space<vmem>>, vector<32x96xf32>
    %c0_2 = arith.constant 0 : index
    %c0_3 = arith.constant 0 : index
    %4 = vector.load %arg3[%c0_2, %c0_3] : memref<4x96xf32, #tpu.memory_space<vmem>>, vector<4x96xf32>
    %c0_4 = arith.constant 0 : index
    %c0_5 = arith.constant 0 : index
    %5 = vector.load %arg6[%c0_4, %c0_5] : memref<1x32xf32, #tpu.memory_space<vmem>>, vector<1x32xf32>
    %c0_6 = arith.constant 0 : index
    %c0_7 = arith.constant 0 : index
    %6 = vector.load %arg9[%c0_6, %c0_7] : memref<4x32xf32, #tpu.memory_space<vmem>>, vector<4x32xf32>
    %c0_i32_8 = arith.constant 0 : i32
    %7 = arith.index_cast %c0_i32_8 : i32 to index
    %c0_9 = arith.constant 0 : index
    %c0_10 = arith.constant 0 : index
    %8 = vector.load %arg2[%7, %c0_9, %c0_10] : memref<8x4x96xf32, #tpu.memory_space<vmem>>, vector<1x4x96xf32>
    %9 = vector.shape_cast %8 : vector<1x4x96xf32> to vector<4x96xf32>
    %10 = arith.addf %9, %4 : vector<4x96xf32>
    %cst = arith.constant dense<0.000000e+00> : vector<4x96xf32>
    %11 = tpu.matmul %6, %3, %cst {dimension_numbers = #tpu.dot_dimension_numbers<[1], [0], [0], [1], [0, 0, 1, 1], [], []>} : vector<4x32xf32>, vector<32x96xf32>, vector<4x96xf32> -> vector<4x96xf32>
    %12 = vector.extract_strided_slice %10 {offsets = [0, 0], sizes = [4, 32], strides = [1, 1]} : vector<4x96xf32> to vector<4x32xf32>
    %13 = vector.extract_strided_slice %11 {offsets = [0, 0], sizes = [4, 32], strides = [1, 1]} : vector<4x96xf32> to vector<4x32xf32>
    %14 = arith.addf %12, %13 : vector<4x32xf32>
    %15 = arith.negf %14 : vector<4x32xf32>
    %16 = math.exp %15 : vector<4x32xf32>
    %cst_11 = arith.constant 1.000000e+00 : f32
    %17 = vector.broadcast %cst_11 : f32 to vector<4x32xf32>
    %18 = arith.addf %17, %16 : vector<4x32xf32>
    %19 = arith.divf %17, %18 : vector<4x32xf32>
    %20 = vector.extract_strided_slice %10 {offsets = [0, 32], sizes = [4, 32], strides = [1, 1]} : vector<4x96xf32> to vector<4x32xf32>
    %21 = vector.extract_strided_slice %11 {offsets = [0, 32], sizes = [4, 32], strides = [1, 1]} : vector<4x96xf32> to vector<4x32xf32>
    %22 = arith.addf %20, %21 : vector<4x32xf32>
    %23 = arith.negf %22 : vector<4x32xf32>
    %24 = math.exp %23 : vector<4x32xf32>
    %cst_12 = arith.constant 1.000000e+00 : f32
    %25 = vector.broadcast %cst_12 : f32 to vector<4x32xf32>
    %26 = arith.addf %25, %24 : vector<4x32xf32>
    %27 = arith.divf %25, %26 : vector<4x32xf32>
    %28 = vector.extract_strided_slice %10 {offsets = [0, 64], sizes = [4, 32], strides = [1, 1]} : vector<4x96xf32> to vector<4x32xf32>
    %29 = vector.extract_strided_slice %11 {offsets = [0, 64], sizes = [4, 32], strides = [1, 1]} : vector<4x96xf32> to vector<4x32xf32>
    %30 = vector.broadcast %5 : vector<1x32xf32> to vector<4x32xf32>
    %31 = arith.addf %29, %30 : vector<4x32xf32>
    %32 = arith.mulf %19, %31 : vector<4x32xf32>
    %33 = arith.addf %28, %32 : vector<4x32xf32>
    %34 = math.tanh %33 : vector<4x32xf32>
    %cst_13 = arith.constant 1.000000e+00 : f32
    %35 = vector.broadcast %cst_13 : f32 to vector<4x32xf32>
    %36 = arith.subf %35, %27 : vector<4x32xf32>
    %37 = arith.mulf %36, %34 : vector<4x32xf32>
    %38 = arith.mulf %27, %6 : vector<4x32xf32>
    %39 = arith.addf %37, %38 : vector<4x32xf32>
    %40 = arith.index_cast %c0_i32_8 : i32 to index
    %c0_14 = arith.constant 0 : index
    %c0_15 = arith.constant 0 : index
    %41 = vector.load %arg7[%40, %c0_14, %c0_15] : memref<8x4x32xf32, #tpu.memory_space<vmem>>, vector<1x4x32xf32>
    %42 = vector.shape_cast %41 : vector<1x4x32xf32> to vector<4x32xf32>
    %43 = vector.shape_cast %39 : vector<4x32xf32> to vector<1x4x32xf32>
    tpu.vector_store %arg7[%40, %c0_14, %c0_15], %43 {strides = array<i32>} : memref<8x4x32xf32, #tpu.memory_space<vmem>>, vector<1x4x32xf32>,
    %c1_i32 = arith.constant 1 : i32
    %44 = arith.index_cast %c1_i32 : i32 to index
    %c0_16 = arith.constant 0 : index
    %c0_17 = arith.constant 0 : index
    %45 = vector.load %arg2[%44, %c0_16, %c0_17] : memref<8x4x96xf32, #tpu.memory_space<vmem>>, vector<1x4x96xf32>
    %46 = vector.shape_cast %45 : vector<1x4x96xf32> to vector<4x96xf32>
    %47 = arith.addf %46, %4 : vector<4x96xf32>
    %cst_18 = arith.constant dense<0.000000e+00> : vector<4x96xf32>
    %48 = tpu.matmul %39, %3, %cst_18 {dimension_numbers = #tpu.dot_dimension_numbers<[1], [0], [0], [1], [0, 0, 1, 1], [], []>} : vector<4x32xf32>, vector<32x96xf32>, vector<4x96xf32> -> vector<4x96xf32>
    %49 = vector.extract_strided_slice %47 {offsets = [0, 0], sizes = [4, 32], strides = [1, 1]} : vector<4x96xf32> to vector<4x32xf32>
    %50 = vector.extract_strided_slice %48 {offsets = [0, 0], sizes = [4, 32], strides = [1, 1]} : vector<4x96xf32> to vector<4x32xf32>
    %51 = arith.addf %49, %50 : vector<4x32xf32>
    %52 = arith.negf %51 : vector<4x32xf32>
    %53 = math.exp %52 : vector<4x32xf32>
    %cst_19 = arith.constant 1.000000e+00 : f32
    %54 = vector.broadcast %cst_19 : f32 to vector<4x32xf32>
    %55 = arith.addf %54, %53 : vector<4x32xf32>
    %56 = arith.divf %54, %55 : vector<4x32xf32>
    %57 = vector.extract_strided_slice %47 {offsets = [0, 32], sizes = [4, 32], strides = [1, 1]} : vector<4x96xf32> to vector<4x32xf32>
    %58 = vector.extract_strided_slice %48 {offsets = [0, 32], sizes = [4, 32], strides = [1, 1]} : vector<4x96xf32> to vector<4x32xf32>
    %59 = arith.addf %57, %58 : vector<4x32xf32>
    %60 = arith.negf %59 : vector<4x32xf32>
    %61 = math.exp %60 : vector<4x32xf32>
    %cst_20 = arith.constant 1.000000e+00 : f32
    %62 = vector.broadcast %cst_20 : f32 to vector<4x32xf32>
    %63 = arith.addf %62, %61 : vector<4x32xf32>
    %64 = arith.divf %62, %63 : vector<4x32xf32>
    %65 = vector.extract_strided_slice %47 {offsets = [0, 64], sizes = [4, 32], strides = [1, 1]} : vector<4x96xf32> to vector<4x32xf32>
    %66 = vector.extract_strided_slice %48 {offsets = [0, 64], sizes = [4, 32], strides = [1, 1]} : vector<4x96xf32> to vector<4x32xf32>
    %67 = vector.broadcast %5 : vector<1x32xf32> to vector<4x32xf32>
    %68 = arith.addf %66, %67 : vector<4x32xf32>
    %69 = arith.mulf %56, %68 : vector<4x32xf32>
    %70 = arith.addf %65, %69 : vector<4x32xf32>
    %71 = math.tanh %70 : vector<4x32xf32>
    %cst_21 = arith.constant 1.000000e+00 : f32
    %72 = vector.broadcast %cst_21 : f32 to vector<4x32xf32>
    %73 = arith.subf %72, %64 : vector<4x32xf32>
    %74 = arith.mulf %73, %71 : vector<4x32xf32>
    %75 = arith.mulf %64, %39 : vector<4x32xf32>
    %76 = arith.addf %74, %75 : vector<4x32xf32>
    %77 = arith.index_cast %c1_i32 : i32 to index
    %c0_22 = arith.constant 0 : index
    %c0_23 = arith.constant 0 : index
    %78 = vector.load %arg7[%77, %c0_22, %c0_23] : memref<8x4x32xf32, #tpu.memory_space<vmem>>, vector<1x4x32xf32>
    %79 = vector.shape_cast %78 : vector<1x4x32xf32> to vector<4x32xf32>
    %80 = vector.shape_cast %76 : vector<4x32xf32> to vector<1x4x32xf32>
    tpu.vector_store %arg7[%77, %c0_22, %c0_23], %80 {strides = array<i32>} : memref<8x4x32xf32, #tpu.memory_space<vmem>>, vector<1x4x32xf32>,
    %c2_i32 = arith.constant 2 : i32
    %81 = arith.index_cast %c2_i32 : i32 to index
    %c0_24 = arith.constant 0 : index
    %c0_25 = arith.constant 0 : index
    %82 = vector.load %arg2[%81, %c0_24, %c0_25] : memref<8x4x96xf32, #tpu.memory_space<vmem>>, vector<1x4x96xf32>
    %83 = vector.shape_cast %82 : vector<1x4x96xf32> to vector<4x96xf32>
    %84 = arith.addf %83, %4 : vector<4x96xf32>
    %cst_26 = arith.constant dense<0.000000e+00> : vector<4x96xf32>
    %85 = tpu.matmul %76, %3, %cst_26 {dimension_numbers = #tpu.dot_dimension_numbers<[1], [0], [0], [1], [0, 0, 1, 1], [], []>} : vector<4x32xf32>, vector<32x96xf32>, vector<4x96xf32> -> vector<4x96xf32>
    %86 = vector.extract_strided_slice %84 {offsets = [0, 0], sizes = [4, 32], strides = [1, 1]} : vector<4x96xf32> to vector<4x32xf32>
    %87 = vector.extract_strided_slice %85 {offsets = [0, 0], sizes = [4, 32], strides = [1, 1]} : vector<4x96xf32> to vector<4x32xf32>
    %88 = arith.addf %86, %87 : vector<4x32xf32>
    %89 = arith.negf %88 : vector<4x32xf32>
    %90 = math.exp %89 : vector<4x32xf32>
    %cst_27 = arith.constant 1.000000e+00 : f32
    %91 = vector.broadcast %cst_27 : f32 to vector<4x32xf32>
    %92 = arith.addf %91, %90 : vector<4x32xf32>
    %93 = arith.divf %91, %92 : vector<4x32xf32>
    %94 = vector.extract_strided_slice %84 {offsets = [0, 32], sizes = [4, 32], strides = [1, 1]} : vector<4x96xf32> to vector<4x32xf32>
    %95 = vector.extract_strided_slice %85 {offsets = [0, 32], sizes = [4, 32], strides = [1, 1]} : vector<4x96xf32> to vector<4x32xf32>
    %96 = arith.addf %94, %95 : vector<4x32xf32>
    %97 = arith.negf %96 : vector<4x32xf32>
    %98 = math.exp %97 : vector<4x32xf32>
    %cst_28 = arith.constant 1.000000e+00 : f32
    %99 = vector.broadcast %cst_28 : f32 to vector<4x32xf32>
    %100 = arith.addf %99, %98 : vector<4x32xf32>
    %101 = arith.divf %99, %100 : vector<4x32xf32>
    %102 = vector.extract_strided_slice %84 {offsets = [0, 64], sizes = [4, 32], strides = [1, 1]} : vector<4x96xf32> to vector<4x32xf32>
    %103 = vector.extract_strided_slice %85 {offsets = [0, 64], sizes = [4, 32], strides = [1, 1]} : vector<4x96xf32> to vector<4x32xf32>
    %104 = vector.broadcast %5 : vector<1x32xf32> to vector<4x32xf32>
    %105 = arith.addf %103, %104 : vector<4x32xf32>
    %106 = arith.mulf %93, %105 : vector<4x32xf32>
    %107 = arith.addf %102, %106 : vector<4x32xf32>
    %108 = math.tanh %107 : vector<4x32xf32>
    %cst_29 = arith.constant 1.000000e+00 : f32
    %109 = vector.broadcast %cst_29 : f32 to vector<4x32xf32>
    %110 = arith.subf %109, %101 : vector<4x32xf32>
    %111 = arith.mulf %110, %108 : vector<4x32xf32>
    %112 = arith.mulf %101, %76 : vector<4x32xf32>
    %113 = arith.addf %111, %112 : vector<4x32xf32>
    %114 = arith.index_cast %c2_i32 : i32 to index
    %c0_30 = arith.constant 0 : index
    %c0_31 = arith.constant 0 : index
    %115 = vector.load %arg7[%114, %c0_30, %c0_31] : memref<8x4x32xf32, #tpu.memory_space<vmem>>, vector<1x4x32xf32>
    %116 = vector.shape_cast %115 : vector<1x4x32xf32> to vector<4x32xf32>
    %117 = vector.shape_cast %113 : vector<4x32xf32> to vector<1x4x32xf32>
    tpu.vector_store %arg7[%114, %c0_30, %c0_31], %117 {strides = array<i32>} : memref<8x4x32xf32, #tpu.memory_space<vmem>>, vector<1x4x32xf32>,
    %c3_i32 = arith.constant 3 : i32
    %118 = arith.index_cast %c3_i32 : i32 to index
    %c0_32 = arith.constant 0 : index
    %c0_33 = arith.constant 0 : index
    %119 = vector.load %arg2[%118, %c0_32, %c0_33] : memref<8x4x96xf32, #tpu.memory_space<vmem>>, vector<1x4x96xf32>
    %120 = vector.shape_cast %119 : vector<1x4x96xf32> to vector<4x96xf32>
    %121 = arith.addf %120, %4 : vector<4x96xf32>
    %cst_34 = arith.constant dense<0.000000e+00> : vector<4x96xf32>
    %122 = tpu.matmul %113, %3, %cst_34 {dimension_numbers = #tpu.dot_dimension_numbers<[1], [0], [0], [1], [0, 0, 1, 1], [], []>} : vector<4x32xf32>, vector<32x96xf32>, vector<4x96xf32> -> vector<4x96xf32>
    %123 = vector.extract_strided_slice %121 {offsets = [0, 0], sizes = [4, 32], strides = [1, 1]} : vector<4x96xf32> to vector<4x32xf32>
    %124 = vector.extract_strided_slice %122 {offsets = [0, 0], sizes = [4, 32], strides = [1, 1]} : vector<4x96xf32> to vector<4x32xf32>
    %125 = arith.addf %123, %124 : vector<4x32xf32>
    %126 = arith.negf %125 : vector<4x32xf32>
    %127 = math.exp %126 : vector<4x32xf32>
    %cst_35 = arith.constant 1.000000e+00 : f32
    %128 = vector.broadcast %cst_35 : f32 to vector<4x32xf32>
    %129 = arith.addf %128, %127 : vector<4x32xf32>
    %130 = arith.divf %128, %129 : vector<4x32xf32>
    %131 = vector.extract_strided_slice %121 {offsets = [0, 32], sizes = [4, 32], strides = [1, 1]} : vector<4x96xf32> to vector<4x32xf32>
    %132 = vector.extract_strided_slice %122 {offsets = [0, 32], sizes = [4, 32], strides = [1, 1]} : vector<4x96xf32> to vector<4x32xf32>
    %133 = arith.addf %131, %132 : vector<4x32xf32>
    %134 = arith.negf %133 : vector<4x32xf32>
    %135 = math.exp %134 : vector<4x32xf32>
    %cst_36 = arith.constant 1.000000e+00 : f32
    %136 = vector.broadcast %cst_36 : f32 to vector<4x32xf32>
    %137 = arith.addf %136, %135 : vector<4x32xf32>
    %138 = arith.divf %136, %137 : vector<4x32xf32>
    %139 = vector.extract_strided_slice %121 {offsets = [0, 64], sizes = [4, 32], strides = [1, 1]} : vector<4x96xf32> to vector<4x32xf32>
    %140 = vector.extract_strided_slice %122 {offsets = [0, 64], sizes = [4, 32], strides = [1, 1]} : vector<4x96xf32> to vector<4x32xf32>
    %141 = vector.broadcast %5 : vector<1x32xf32> to vector<4x32xf32>
    %142 = arith.addf %140, %141 : vector<4x32xf32>
    %143 = arith.mulf %130, %142 : vector<4x32xf32>
    %144 = arith.addf %139, %143 : vector<4x32xf32>
    %145 = math.tanh %144 : vector<4x32xf32>
    %cst_37 = arith.constant 1.000000e+00 : f32
    %146 = vector.broadcast %cst_37 : f32 to vector<4x32xf32>
    %147 = arith.subf %146, %138 : vector<4x32xf32>
    %148 = arith.mulf %147, %145 : vector<4x32xf32>
    %149 = arith.mulf %138, %113 : vector<4x32xf32>
    %150 = arith.addf %148, %149 : vector<4x32xf32>
    %151 = arith.index_cast %c3_i32 : i32 to index
    %c0_38 = arith.constant 0 : index
    %c0_39 = arith.constant 0 : index
    %152 = vector.load %arg7[%151, %c0_38, %c0_39] : memref<8x4x32xf32, #tpu.memory_space<vmem>>, vector<1x4x32xf32>
    %153 = vector.shape_cast %152 : vector<1x4x32xf32> to vector<4x32xf32>
    %154 = vector.shape_cast %150 : vector<4x32xf32> to vector<1x4x32xf32>
    tpu.vector_store %arg7[%151, %c0_38, %c0_39], %154 {strides = array<i32>} : memref<8x4x32xf32, #tpu.memory_space<vmem>>, vector<1x4x32xf32>,
    %c4_i32 = arith.constant 4 : i32
    %155 = arith.index_cast %c4_i32 : i32 to index
    %c0_40 = arith.constant 0 : index
    %c0_41 = arith.constant 0 : index
    %156 = vector.load %arg2[%155, %c0_40, %c0_41] : memref<8x4x96xf32, #tpu.memory_space<vmem>>, vector<1x4x96xf32>
    %157 = vector.shape_cast %156 : vector<1x4x96xf32> to vector<4x96xf32>
    %158 = arith.addf %157, %4 : vector<4x96xf32>
    %cst_42 = arith.constant dense<0.000000e+00> : vector<4x96xf32>
    %159 = tpu.matmul %150, %3, %cst_42 {dimension_numbers = #tpu.dot_dimension_numbers<[1], [0], [0], [1], [0, 0, 1, 1], [], []>} : vector<4x32xf32>, vector<32x96xf32>, vector<4x96xf32> -> vector<4x96xf32>
    %160 = vector.extract_strided_slice %158 {offsets = [0, 0], sizes = [4, 32], strides = [1, 1]} : vector<4x96xf32> to vector<4x32xf32>
    %161 = vector.extract_strided_slice %159 {offsets = [0, 0], sizes = [4, 32], strides = [1, 1]} : vector<4x96xf32> to vector<4x32xf32>
    %162 = arith.addf %160, %161 : vector<4x32xf32>
    %163 = arith.negf %162 : vector<4x32xf32>
    %164 = math.exp %163 : vector<4x32xf32>
    %cst_43 = arith.constant 1.000000e+00 : f32
    %165 = vector.broadcast %cst_43 : f32 to vector<4x32xf32>
    %166 = arith.addf %165, %164 : vector<4x32xf32>
    %167 = arith.divf %165, %166 : vector<4x32xf32>
    %168 = vector.extract_strided_slice %158 {offsets = [0, 32], sizes = [4, 32], strides = [1, 1]} : vector<4x96xf32> to vector<4x32xf32>
    %169 = vector.extract_strided_slice %159 {offsets = [0, 32], sizes = [4, 32], strides = [1, 1]} : vector<4x96xf32> to vector<4x32xf32>
    %170 = arith.addf %168, %169 : vector<4x32xf32>
    %171 = arith.negf %170 : vector<4x32xf32>
    %172 = math.exp %171 : vector<4x32xf32>
    %cst_44 = arith.constant 1.000000e+00 : f32
    %173 = vector.broadcast %cst_44 : f32 to vector<4x32xf32>
    %174 = arith.addf %173, %172 : vector<4x32xf32>
    %175 = arith.divf %173, %174 : vector<4x32xf32>
    %176 = vector.extract_strided_slice %158 {offsets = [0, 64], sizes = [4, 32], strides = [1, 1]} : vector<4x96xf32> to vector<4x32xf32>
    %177 = vector.extract_strided_slice %159 {offsets = [0, 64], sizes = [4, 32], strides = [1, 1]} : vector<4x96xf32> to vector<4x32xf32>
    %178 = vector.broadcast %5 : vector<1x32xf32> to vector<4x32xf32>
    %179 = arith.addf %177, %178 : vector<4x32xf32>
    %180 = arith.mulf %167, %179 : vector<4x32xf32>
    %181 = arith.addf %176, %180 : vector<4x32xf32>
    %182 = math.tanh %181 : vector<4x32xf32>
    %cst_45 = arith.constant 1.000000e+00 : f32
    %183 = vector.broadcast %cst_45 : f32 to vector<4x32xf32>
    %184 = arith.subf %183, %175 : vector<4x32xf32>
    %185 = arith.mulf %184, %182 : vector<4x32xf32>
    %186 = arith.mulf %175, %150 : vector<4x32xf32>
    %187 = arith.addf %185, %186 : vector<4x32xf32>
    %188 = arith.index_cast %c4_i32 : i32 to index
    %c0_46 = arith.constant 0 : index
    %c0_47 = arith.constant 0 : index
    %189 = vector.load %arg7[%188, %c0_46, %c0_47] : memref<8x4x32xf32, #tpu.memory_space<vmem>>, vector<1x4x32xf32>
    %190 = vector.shape_cast %189 : vector<1x4x32xf32> to vector<4x32xf32>
    %191 = vector.shape_cast %187 : vector<4x32xf32> to vector<1x4x32xf32>
    tpu.vector_store %arg7[%188, %c0_46, %c0_47], %191 {strides = array<i32>} : memref<8x4x32xf32, #tpu.memory_space<vmem>>, vector<1x4x32xf32>,
    %c5_i32 = arith.constant 5 : i32
    %192 = arith.index_cast %c5_i32 : i32 to index
    %c0_48 = arith.constant 0 : index
    %c0_49 = arith.constant 0 : index
    %193 = vector.load %arg2[%192, %c0_48, %c0_49] : memref<8x4x96xf32, #tpu.memory_space<vmem>>, vector<1x4x96xf32>
    %194 = vector.shape_cast %193 : vector<1x4x96xf32> to vector<4x96xf32>
    %195 = arith.addf %194, %4 : vector<4x96xf32>
    %cst_50 = arith.constant dense<0.000000e+00> : vector<4x96xf32>
    %196 = tpu.matmul %187, %3, %cst_50 {dimension_numbers = #tpu.dot_dimension_numbers<[1], [0], [0], [1], [0, 0, 1, 1], [], []>} : vector<4x32xf32>, vector<32x96xf32>, vector<4x96xf32> -> vector<4x96xf32>
    %197 = vector.extract_strided_slice %195 {offsets = [0, 0], sizes = [4, 32], strides = [1, 1]} : vector<4x96xf32> to vector<4x32xf32>
    %198 = vector.extract_strided_slice %196 {offsets = [0, 0], sizes = [4, 32], strides = [1, 1]} : vector<4x96xf32> to vector<4x32xf32>
    %199 = arith.addf %197, %198 : vector<4x32xf32>
    %200 = arith.negf %199 : vector<4x32xf32>
    %201 = math.exp %200 : vector<4x32xf32>
    %cst_51 = arith.constant 1.000000e+00 : f32
    %202 = vector.broadcast %cst_51 : f32 to vector<4x32xf32>
    %203 = arith.addf %202, %201 : vector<4x32xf32>
    %204 = arith.divf %202, %203 : vector<4x32xf32>
    %205 = vector.extract_strided_slice %195 {offsets = [0, 32], sizes = [4, 32], strides = [1, 1]} : vector<4x96xf32> to vector<4x32xf32>
    %206 = vector.extract_strided_slice %196 {offsets = [0, 32], sizes = [4, 32], strides = [1, 1]} : vector<4x96xf32> to vector<4x32xf32>
    %207 = arith.addf %205, %206 : vector<4x32xf32>
    %208 = arith.negf %207 : vector<4x32xf32>
    %209 = math.exp %208 : vector<4x32xf32>
    %cst_52 = arith.constant 1.000000e+00 : f32
    %210 = vector.broadcast %cst_52 : f32 to vector<4x32xf32>
    %211 = arith.addf %210, %209 : vector<4x32xf32>
    %212 = arith.divf %210, %211 : vector<4x32xf32>
    %213 = vector.extract_strided_slice %195 {offsets = [0, 64], sizes = [4, 32], strides = [1, 1]} : vector<4x96xf32> to vector<4x32xf32>
    %214 = vector.extract_strided_slice %196 {offsets = [0, 64], sizes = [4, 32], strides = [1, 1]} : vector<4x96xf32> to vector<4x32xf32>
    %215 = vector.broadcast %5 : vector<1x32xf32> to vector<4x32xf32>
    %216 = arith.addf %214, %215 : vector<4x32xf32>
    %217 = arith.mulf %204, %216 : vector<4x32xf32>
    %218 = arith.addf %213, %217 : vector<4x32xf32>
    %219 = math.tanh %218 : vector<4x32xf32>
    %cst_53 = arith.constant 1.000000e+00 : f32
    %220 = vector.broadcast %cst_53 : f32 to vector<4x32xf32>
    %221 = arith.subf %220, %212 : vector<4x32xf32>
    %222 = arith.mulf %221, %219 : vector<4x32xf32>
    %223 = arith.mulf %212, %187 : vector<4x32xf32>
    %224 = arith.addf %222, %223 : vector<4x32xf32>
    %225 = arith.index_cast %c5_i32 : i32 to index
    %c0_54 = arith.constant 0 : index
    %c0_55 = arith.constant 0 : index
    %226 = vector.load %arg7[%225, %c0_54, %c0_55] : memref<8x4x32xf32, #tpu.memory_space<vmem>>, vector<1x4x32xf32>
    %227 = vector.shape_cast %226 : vector<1x4x32xf32> to vector<4x32xf32>
    %228 = vector.shape_cast %224 : vector<4x32xf32> to vector<1x4x32xf32>
    tpu.vector_store %arg7[%225, %c0_54, %c0_55], %228 {strides = array<i32>} : memref<8x4x32xf32, #tpu.memory_space<vmem>>, vector<1x4x32xf32>,
    %c6_i32 = arith.constant 6 : i32
    %229 = arith.index_cast %c6_i32 : i32 to index
    %c0_56 = arith.constant 0 : index
    %c0_57 = arith.constant 0 : index
    %230 = vector.load %arg2[%229, %c0_56, %c0_57] : memref<8x4x96xf32, #tpu.memory_space<vmem>>, vector<1x4x96xf32>
    %231 = vector.shape_cast %230 : vector<1x4x96xf32> to vector<4x96xf32>
    %232 = arith.addf %231, %4 : vector<4x96xf32>
    %cst_58 = arith.constant dense<0.000000e+00> : vector<4x96xf32>
    %233 = tpu.matmul %224, %3, %cst_58 {dimension_numbers = #tpu.dot_dimension_numbers<[1], [0], [0], [1], [0, 0, 1, 1], [], []>} : vector<4x32xf32>, vector<32x96xf32>, vector<4x96xf32> -> vector<4x96xf32>
    %234 = vector.extract_strided_slice %232 {offsets = [0, 0], sizes = [4, 32], strides = [1, 1]} : vector<4x96xf32> to vector<4x32xf32>
    %235 = vector.extract_strided_slice %233 {offsets = [0, 0], sizes = [4, 32], strides = [1, 1]} : vector<4x96xf32> to vector<4x32xf32>
    %236 = arith.addf %234, %235 : vector<4x32xf32>
    %237 = arith.negf %236 : vector<4x32xf32>
    %238 = math.exp %237 : vector<4x32xf32>
    %cst_59 = arith.constant 1.000000e+00 : f32
    %239 = vector.broadcast %cst_59 : f32 to vector<4x32xf32>
    %240 = arith.addf %239, %238 : vector<4x32xf32>
    %241 = arith.divf %239, %240 : vector<4x32xf32>
    %242 = vector.extract_strided_slice %232 {offsets = [0, 32], sizes = [4, 32], strides = [1, 1]} : vector<4x96xf32> to vector<4x32xf32>
    %243 = vector.extract_strided_slice %233 {offsets = [0, 32], sizes = [4, 32], strides = [1, 1]} : vector<4x96xf32> to vector<4x32xf32>
    %244 = arith.addf %242, %243 : vector<4x32xf32>
    %245 = arith.negf %244 : vector<4x32xf32>
    %246 = math.exp %245 : vector<4x32xf32>
    %cst_60 = arith.constant 1.000000e+00 : f32
    %247 = vector.broadcast %cst_60 : f32 to vector<4x32xf32>
    %248 = arith.addf %247, %246 : vector<4x32xf32>
    %249 = arith.divf %247, %248 : vector<4x32xf32>
    %250 = vector.extract_strided_slice %232 {offsets = [0, 64], sizes = [4, 32], strides = [1, 1]} : vector<4x96xf32> to vector<4x32xf32>
    %251 = vector.extract_strided_slice %233 {offsets = [0, 64], sizes = [4, 32], strides = [1, 1]} : vector<4x96xf32> to vector<4x32xf32>
    %252 = vector.broadcast %5 : vector<1x32xf32> to vector<4x32xf32>
    %253 = arith.addf %251, %252 : vector<4x32xf32>
    %254 = arith.mulf %241, %253 : vector<4x32xf32>
    %255 = arith.addf %250, %254 : vector<4x32xf32>
    %256 = math.tanh %255 : vector<4x32xf32>
    %cst_61 = arith.constant 1.000000e+00 : f32
    %257 = vector.broadcast %cst_61 : f32 to vector<4x32xf32>
    %258 = arith.subf %257, %249 : vector<4x32xf32>
    %259 = arith.mulf %258, %256 : vector<4x32xf32>
    %260 = arith.mulf %249, %224 : vector<4x32xf32>
    %261 = arith.addf %259, %260 : vector<4x32xf32>
    %262 = arith.index_cast %c6_i32 : i32 to index
    %c0_62 = arith.constant 0 : index
    %c0_63 = arith.constant 0 : index
    %263 = vector.load %arg7[%262, %c0_62, %c0_63] : memref<8x4x32xf32, #tpu.memory_space<vmem>>, vector<1x4x32xf32>
    %264 = vector.shape_cast %263 : vector<1x4x32xf32> to vector<4x32xf32>
    %265 = vector.shape_cast %261 : vector<4x32xf32> to vector<1x4x32xf32>
    tpu.vector_store %arg7[%262, %c0_62, %c0_63], %265 {strides = array<i32>} : memref<8x4x32xf32, #tpu.memory_space<vmem>>, vector<1x4x32xf32>,
    %c7_i32 = arith.constant 7 : i32
    %266 = arith.index_cast %c7_i32 : i32 to index
    %c0_64 = arith.constant 0 : index
    %c0_65 = arith.constant 0 : index
    %267 = vector.load %arg2[%266, %c0_64, %c0_65] : memref<8x4x96xf32, #tpu.memory_space<vmem>>, vector<1x4x96xf32>
    %268 = vector.shape_cast %267 : vector<1x4x96xf32> to vector<4x96xf32>
    %269 = arith.addf %268, %4 : vector<4x96xf32>
    %cst_66 = arith.constant dense<0.000000e+00> : vector<4x96xf32>
    %270 = tpu.matmul %261, %3, %cst_66 {dimension_numbers = #tpu.dot_dimension_numbers<[1], [0], [0], [1], [0, 0, 1, 1], [], []>} : vector<4x32xf32>, vector<32x96xf32>, vector<4x96xf32> -> vector<4x96xf32>
    %271 = vector.extract_strided_slice %269 {offsets = [0, 0], sizes = [4, 32], strides = [1, 1]} : vector<4x96xf32> to vector<4x32xf32>
    %272 = vector.extract_strided_slice %270 {offsets = [0, 0], sizes = [4, 32], strides = [1, 1]} : vector<4x96xf32> to vector<4x32xf32>
    %273 = arith.addf %271, %272 : vector<4x32xf32>
    %274 = arith.negf %273 : vector<4x32xf32>
    %275 = math.exp %274 : vector<4x32xf32>
    %cst_67 = arith.constant 1.000000e+00 : f32
    %276 = vector.broadcast %cst_67 : f32 to vector<4x32xf32>
    %277 = arith.addf %276, %275 : vector<4x32xf32>
    %278 = arith.divf %276, %277 : vector<4x32xf32>
    %279 = vector.extract_strided_slice %269 {offsets = [0, 32], sizes = [4, 32], strides = [1, 1]} : vector<4x96xf32> to vector<4x32xf32>
    %280 = vector.extract_strided_slice %270 {offsets = [0, 32], sizes = [4, 32], strides = [1, 1]} : vector<4x96xf32> to vector<4x32xf32>
    %281 = arith.addf %279, %280 : vector<4x32xf32>
    %282 = arith.negf %281 : vector<4x32xf32>
    %283 = math.exp %282 : vector<4x32xf32>
    %cst_68 = arith.constant 1.000000e+00 : f32
    %284 = vector.broadcast %cst_68 : f32 to vector<4x32xf32>
    %285 = arith.addf %284, %283 : vector<4x32xf32>
    %286 = arith.divf %284, %285 : vector<4x32xf32>
    %287 = vector.extract_strided_slice %269 {offsets = [0, 64], sizes = [4, 32], strides = [1, 1]} : vector<4x96xf32> to vector<4x32xf32>
    %288 = vector.extract_strided_slice %270 {offsets = [0, 64], sizes = [4, 32], strides = [1, 1]} : vector<4x96xf32> to vector<4x32xf32>
    %289 = vector.broadcast %5 : vector<1x32xf32> to vector<4x32xf32>
    %290 = arith.addf %288, %289 : vector<4x32xf32>
    %291 = arith.mulf %278, %290 : vector<4x32xf32>
    %292 = arith.addf %287, %291 : vector<4x32xf32>
    %293 = math.tanh %292 : vector<4x32xf32>
    %cst_69 = arith.constant 1.000000e+00 : f32
    %294 = vector.broadcast %cst_69 : f32 to vector<4x32xf32>
    %295 = arith.subf %294, %286 : vector<4x32xf32>
    %296 = arith.mulf %295, %293 : vector<4x32xf32>
    %297 = arith.mulf %286, %261 : vector<4x32xf32>
    %298 = arith.addf %296, %297 : vector<4x32xf32>
    %299 = arith.index_cast %c7_i32 : i32 to index
    %c0_70 = arith.constant 0 : index
    %c0_71 = arith.constant 0 : index
    %300 = vector.load %arg7[%299, %c0_70, %c0_71] : memref<8x4x32xf32, #tpu.memory_space<vmem>>, vector<1x4x32xf32>
    %301 = vector.shape_cast %300 : vector<1x4x32xf32> to vector<4x32xf32>
    %302 = vector.shape_cast %298 : vector<4x32xf32> to vector<1x4x32xf32>
    tpu.vector_store %arg7[%299, %c0_70, %c0_71], %302 {strides = array<i32>} : memref<8x4x32xf32, #tpu.memory_space<vmem>>, vector<1x4x32xf32>,
    %c8_i32 = arith.constant 8 : i32
    %c0_72 = arith.constant 0 : index
    %c0_73 = arith.constant 0 : index
    %303 = vector.load %arg9[%c0_72, %c0_73] : memref<4x32xf32, #tpu.memory_space<vmem>>, vector<4x32xf32>
    tpu.vector_store %arg9[%c0_72, %c0_73], %298 {strides = array<i32>} : memref<4x32xf32, #tpu.memory_space<vmem>>, vector<4x32xf32>,
    %c0_i32_74 = arith.constant 0 : i32
    %304 = arith.cmpi eq, %arg1, %c0_i32_74 : i32
    %305 = arith.extui %304 : i1 to i32
    %c0_i32_75 = arith.constant 0 : i32
    %306 = arith.cmpi ne, %305, %c0_i32_75 : i32
    scf.if %306 {
      %c0_76 = arith.constant 0 : index
      %c0_77 = arith.constant 0 : index
      %307 = vector.load %arg8[%c0_76, %c0_77] : memref<4x32xf32, #tpu.memory_space<vmem>>, vector<4x32xf32>
      tpu.vector_store %arg8[%c0_76, %c0_77], %298 {strides = array<i32>} : memref<4x32xf32, #tpu.memory_space<vmem>>, vector<4x32xf32>,
    } else {
    }
    return
  }
  func.func @transform_0(%arg0: i32, %arg1: i32) -> (i32, i32, i32) {
    %c0_i32 = arith.constant 0 : i32
    %c0_i32_0 = arith.constant 0 : i32
    return %arg1, %arg0, %c0_i32 : i32, i32, i32
  }
  func.func @transform_1(%arg0: i32, %arg1: i32) -> (i32, i32) {
    %c0_i32 = arith.constant 0 : i32
    %c0_i32_0 = arith.constant 0 : i32
    return %arg0, %c0_i32 : i32, i32
  }
  func.func @transform_2(%arg0: i32, %arg1: i32) -> (i32, i32) {
    %c0_i32 = arith.constant 0 : i32
    %c0_i32_0 = arith.constant 0 : i32
    return %arg0, %c0_i32 : i32, i32
  }
  func.func @transform_3(%arg0: i32, %arg1: i32) -> (i32, i32) {
    %c0_i32 = arith.constant 0 : i32
    %c0_i32_0 = arith.constant 0 : i32
    %c0_i32_1 = arith.constant 0 : i32
    return %c0_i32, %c0_i32_0 : i32, i32
  }
  func.func @transform_4(%arg0: i32, %arg1: i32) -> (i32, i32) {
    %c0_i32 = arith.constant 0 : i32
    %c0_i32_0 = arith.constant 0 : i32
    %c0_i32_1 = arith.constant 0 : i32
    return %c0_i32, %c0_i32_0 : i32, i32
  }
  func.func @transform_5(%arg0: i32, %arg1: i32) -> (i32, i32, i32) {
    %c0_i32 = arith.constant 0 : i32
    %c0_i32_0 = arith.constant 0 : i32
    return %arg1, %arg0, %c0_i32 : i32, i32, i32
  }
  func.func @transform_6(%arg0: i32, %arg1: i32) -> (i32, i32) {
    %c0_i32 = arith.constant 0 : i32
    %c0_i32_0 = arith.constant 0 : i32
    return %arg0, %c0_i32 : i32, i32
  }
}

module attributes {stable_mosaic.version = 11 : i64} {
  func.func @input_proj_kernel(%arg0: i32, %arg1: i32, %arg2: memref<32x32xf32, #tpu.memory_space<vmem>>, %arg3: memref<32x96xf32, #tpu.memory_space<vmem>>, %arg4: memref<32x96xf32, #tpu.memory_space<vmem>>) attributes {dimension_semantics = [#tpu.dimension_semantics<parallel>, #tpu.dimension_semantics<parallel>], iteration_bounds = array<i64: 1, 1>, scalar_prefetch = 0 : i64, scratch_operands = 0 : i64, tpu.core_type = #tpu.core_type<tc>, window_params = [{transform_indices = @transform_0, window_bounds = array<i64: 32, 32>}, {transform_indices = @transform_1, window_bounds = array<i64: 32, 96>}, {transform_indices = @transform_2, window_bounds = array<i64: 32, 96>}]} {
    %c0 = arith.constant 0 : index
    %c0_0 = arith.constant 0 : index
    %0 = vector.load %arg2[%c0, %c0_0] : memref<32x32xf32, #tpu.memory_space<vmem>>, vector<32x32xf32>
    %c0_1 = arith.constant 0 : index
    %c0_2 = arith.constant 0 : index
    %1 = vector.load %arg3[%c0_1, %c0_2] : memref<32x96xf32, #tpu.memory_space<vmem>>, vector<32x96xf32>
    %cst = arith.constant dense<0.000000e+00> : vector<32x96xf32>
    %2 = tpu.matmul %0, %1, %cst {dimension_numbers = #tpu.dot_dimension_numbers<[1], [0], [0], [1], [0, 0, 1, 1], [], []>} : vector<32x32xf32>, vector<32x96xf32>, vector<32x96xf32> -> vector<32x96xf32>
    %c0_3 = arith.constant 0 : index
    %c0_4 = arith.constant 0 : index
    %3 = vector.load %arg4[%c0_3, %c0_4] : memref<32x96xf32, #tpu.memory_space<vmem>>, vector<32x96xf32>
    tpu.vector_store %arg4[%c0_3, %c0_4], %2 {strides = array<i32>} : memref<32x96xf32, #tpu.memory_space<vmem>>, vector<32x96xf32>,
    return
  }
  func.func @transform_0(%arg0: i32, %arg1: i32) -> (i32, i32) {
    %c0_i32 = arith.constant 0 : i32
    %c0_i32_0 = arith.constant 0 : i32
    return %arg0, %c0_i32 : i32, i32
  }
  func.func @transform_1(%arg0: i32, %arg1: i32) -> (i32, i32) {
    %c0_i32 = arith.constant 0 : i32
    %c0_i32_0 = arith.constant 0 : i32
    return %c0_i32, %arg1 : i32, i32
  }
  func.func @transform_2(%arg0: i32, %arg1: i32) -> (i32, i32) {
    %c0_i32 = arith.constant 0 : i32
    return %arg0, %arg1 : i32, i32
  }
}

module attributes {stable_mosaic.version = 11 : i64} {
  func.func @dense_kernel(%arg0: i32, %arg1: i32, %arg2: memref<32x32xf32, #tpu.memory_space<vmem>>, %arg3: memref<32x32xf32, #tpu.memory_space<vmem>>, %arg4: memref<1x32xf32, #tpu.memory_space<vmem>>, %arg5: memref<32x32xf32, #tpu.memory_space<vmem>>) attributes {dimension_semantics = [#tpu.dimension_semantics<parallel>, #tpu.dimension_semantics<parallel>], iteration_bounds = array<i64: 1, 1>, scalar_prefetch = 0 : i64, scratch_operands = 0 : i64, tpu.core_type = #tpu.core_type<tc>, window_params = [{transform_indices = @transform_0, window_bounds = array<i64: 32, 32>}, {transform_indices = @transform_1, window_bounds = array<i64: 32, 32>}, {transform_indices = @transform_2, window_bounds = array<i64: 1, 32>}, {transform_indices = @transform_3, window_bounds = array<i64: 32, 32>}]} {
    %c0 = arith.constant 0 : index
    %c0_0 = arith.constant 0 : index
    %0 = vector.load %arg2[%c0, %c0_0] : memref<32x32xf32, #tpu.memory_space<vmem>>, vector<32x32xf32>
    %c0_1 = arith.constant 0 : index
    %c0_2 = arith.constant 0 : index
    %1 = vector.load %arg3[%c0_1, %c0_2] : memref<32x32xf32, #tpu.memory_space<vmem>>, vector<32x32xf32>
    %cst = arith.constant dense<0.000000e+00> : vector<32x32xf32>
    %2 = tpu.matmul %0, %1, %cst {dimension_numbers = #tpu.dot_dimension_numbers<[1], [0], [0], [1], [0, 0, 1, 1], [], []>} : vector<32x32xf32>, vector<32x32xf32>, vector<32x32xf32> -> vector<32x32xf32>
    %c0_3 = arith.constant 0 : index
    %c0_4 = arith.constant 0 : index
    %3 = vector.load %arg4[%c0_3, %c0_4] : memref<1x32xf32, #tpu.memory_space<vmem>>, vector<1x32xf32>
    %4 = vector.broadcast %3 : vector<1x32xf32> to vector<32x32xf32>
    %5 = arith.addf %2, %4 : vector<32x32xf32>
    %c0_5 = arith.constant 0 : index
    %c0_6 = arith.constant 0 : index
    %6 = vector.load %arg5[%c0_5, %c0_6] : memref<32x32xf32, #tpu.memory_space<vmem>>, vector<32x32xf32>
    tpu.vector_store %arg5[%c0_5, %c0_6], %5 {strides = array<i32>} : memref<32x32xf32, #tpu.memory_space<vmem>>, vector<32x32xf32>,
    return
  }
  func.func @transform_0(%arg0: i32, %arg1: i32) -> (i32, i32) {
    %c0_i32 = arith.constant 0 : i32
    %c0_i32_0 = arith.constant 0 : i32
    return %arg0, %c0_i32 : i32, i32
  }
  func.func @transform_1(%arg0: i32, %arg1: i32) -> (i32, i32) {
    %c0_i32 = arith.constant 0 : i32
    %c0_i32_0 = arith.constant 0 : i32
    return %c0_i32, %arg1 : i32, i32
  }
  func.func @transform_2(%arg0: i32, %arg1: i32) -> (i32, i32) {
    %c0_i32 = arith.constant 0 : i32
    %c0_i32_0 = arith.constant 0 : i32
    return %c0_i32, %arg1 : i32, i32
  }
  func.func @transform_3(%arg0: i32, %arg1: i32) -> (i32, i32) {
    %c0_i32 = arith.constant 0 : i32
    return %arg0, %arg1 : i32, i32
  }
}

</mosaic_0001>

<bundles_post_ra>
// kernel: seq2seq_decoder_forward.7
= control target key start
LH: loop header
LB: loop body
LE: loop exit
PB: predicated region body
PF: predicated region fallthrough
CT: control target
= control target key end

     0   :  { %vm17_vm0 = vcmask 130048   ;;  %vm59_vm1 = vcmask 785408   ;;  %s123_s1 = inlined_call_operand.vmem [shape: f32[16,96], index: 1, kind: input, shape index: {}]   ;;  %s124_s0 = inlined_call_operand.vmem [shape: f32[32,16], index: 0, kind: input, shape index: {}]   ;;  %s125_s2 = inlined_call_operand.vmem [shape: f32[32,96], index: 2, kind: output, shape index: {}]  }
   0x1   :  { %v16_v0 = vld [vmem:[%s123_s1 + $0x8] sm:$0xff]  ;;  %v15_v1 = vld [vmem:[%s123_s1] sm:$0xff]  ;;  %v13_v2 = vld [vmem:[%s124_s0 + $0x10] sm:$0xff] }
   0x2   :  { %73 = vmatpush.msra.mxu2 %v16_v0  ;;  %74 = vmatpush.msra.mxu3 %v16_v0  ;;  %v14_v3 = vld [vmem:[%s124_s0 + $0x18] sm:$0xff]  ;;  %v11_v4 = vld [vmem:[%s124_s0] sm:$0xff]  ;;  %v12_v5 = vld [vmem:[%s124_s0 + $0x8] sm:$0xff] }
   0x3   :  { %44 = vmatpush.msra.mxu0 %v16_v0  ;;  %72 = vmatpush.msra.mxu1 %v16_v0 }
   0x4   :  { %76 = vmatpush.msra.mxu2 %v15_v1  ;;  %77 = vmatpush.msra.mxu3 %v15_v1 }
   0x5   :  { %70 = vmatmul.msk.f32.vlgmr.msra.gmra.mxu2 %vm17_vm0, %v13_v2  ;;  %71 = vmatmul.msk.f32.vlgmr.msra.gmra.mxu3 %vm17_vm0, %v14_v3 }
   0x6   :  { %45 = vmatpush.msra.mxu0 %v15_v1  ;;  %75 = vmatpush.msra.mxu1 %v15_v1 }
   0x7   :  { %68 = vmatmul.msk.f32.vlgmr.msra.gmra.mxu0 %vm17_vm0, %v11_v4  ;;  %69 = vmatmul.msk.f32.vlgmr.msra.gmra.mxu1 %vm17_vm0, %v12_v5 }
  0x84   :  { %v47_v6 = vpop.f32.mrf.mxu0  ;;  %v50_v7 = vpop.f32.mrf.mxu1 }
  0x85   :  { %60 = vst.msk [vmem:[%s125_s2] sm:$0xff] %vm59_vm1, %v47_v6 }
  0x86   :  { %61 = vst.msk [vmem:[%s125_s2 + $0x8] sm:$0xff] %vm59_vm1, %v50_v7 }
  0x88   :  { %v53_v8 = vpop.f32.mrf.mxu2  ;;  %v56_v9 = vpop.f32.mrf.mxu3 }
  0x89   :  { %62 = vst.msk [vmem:[%s125_s2 + $0x10] sm:$0xff] %vm59_vm1, %v53_v8 }
  0x8a   :  { %63 = vst.msk [vmem:[%s125_s2 + $0x18] sm:$0xff] %vm59_vm1, %v56_v9 }

// kernel: seq2seq_decoder_forward.6
= control target key start
LH: loop header
LB: loop body
LE: loop exit
PB: predicated region body
PF: predicated region fallthrough
CT: control target
= control target key end

     0   :  { %8 = vsyncpa [#allocation3], 0  ;;  %s101_s15 = smov [#allocation2]   ;;  %s102_s17 = smov 128   ;;  %s136_s0 = inlined_call_operand.vmem [shape: f32[4,32], index: 0, kind: input, shape index: {}]   ;;  %s137_s1 = inlined_call_operand.hbm [shape: f32[32,96], index: 1, kind: input, shape index: {}]   ;;  %s138_s2 = inlined_call_operand.vmem [shape: f32[1,96], index: 2, kind: input, shape index: {}]   ;;  %s139_s3 = inlined_call_operand.vmem [shape: f32[4,96], index: 3, kind: output, shape index: {}]  }
   0x1   :  { %s15_s14 = sshll.u32 %s137_s1, 4  ;;  %s17_s16 = sshll.u32 %s101_s15, 4  ;;  %s16_s14 = int_to_ptr.hbm [resolvable:$true] %s15_s14  ;;  %s18_s16 = int_to_ptr.vmem [resolvable:$true] %s17_s16 }
   0x2   :  { %s103_s18 = smov 8  }
   0x3   :  { %23 = dma.hbm_to_vmem [thread:$0]  %s16_s14, 512, %s18_s16, [#allocation3], %s102_s17, %s102_s17, %s103_s18  }
   0x4   :  { %99 = dma.done.wait [#allocation3], 512  }
   0x5   :  { %100 = vsyncadd [#allocation3], 4294966784  ;;  %v34_v0 = vld [vmem:[#allocation2 + $0x18] sm:$0xff]  ;;  %v33_v1 = vld [vmem:[#allocation2 + $0x10] sm:$0xff]  ;;  %vm39_vm0 = vcmask 261120   ;;  %vm63_vm1 = vcmask 781312  }
   0x6   :  { %55 = vmatpush.msra.mxu0 %v34_v0  ;;  %v32_v2 = vld [vmem:[#allocation2 + $0x8] sm:$0xff]  ;;  %v31_v3 = vld [vmem:[#allocation2] sm:$0xff] }
   0x7   :  { %v30_v4 = vld [vmem:[%s136_s0] sm:$0xf] }
   0x8   :  { %56 = vmatpush.msra.mxu0 %v33_v1  ;;  %v74_v5 = vld [vmem:[%s138_s2] ss:$0 sm:$0xff] }
   0xa   :  { %57 = vmatpush.msra.mxu0 %v32_v2 }
   0xc   :  { %58 = vmatpush.msra.mxu0 %v31_v3 }
   0xd   :  { %70 = vmatmul.msk.f32.vlgmr.msra.gmra.mxu0 %vm39_vm0, %v30_v4 }
  0x8a   :  { %v60_v6 = vpop.f32.mrf.mxu0 }
  0x8b   :  { %v61_v7 = vadd.f32 %v74_v5, %v60_v6 }
  0x8d   :  { %64 = vst.msk [vmem:[%s139_s3] sm:$0xf] %vm63_vm1, %v61_v7 }
  0x8e   :  { %69 = vsyncpa [#allocation3], 1 }

// kernel: seq2seq_decoder_forward.9
= control target key start
LH: loop header
LB: loop body
LE: loop exit
PB: predicated region body
PF: predicated region fallthrough
CT: control target
= control target key end

     0   :  { %vm19_vm0 = vcmask 261120   ;;  %vm61_vm1 = vcmask 785408   ;;  %s137_s1 = inlined_call_operand.vmem [shape: f32[32,96], index: 1, kind: input, shape index: {}]   ;;  %s138_s0 = inlined_call_operand.vmem [shape: f32[32,32], index: 0, kind: input, shape index: {}]   ;;  %s139_s2 = inlined_call_operand.vmem [shape: f32[32,96], index: 2, kind: output, shape index: {}]  }
   0x1   :  { %v18_v0 = vld [vmem:[%s137_s1 + $0x18] sm:$0xff]  ;;  %v17_v1 = vld [vmem:[%s137_s1 + $0x10] sm:$0xff]  ;;  %v16_v2 = vld [vmem:[%s137_s1 + $0x8] sm:$0xff] }
   0x2   :  { %75 = vmatpush.msra.mxu2 %v18_v0  ;;  %76 = vmatpush.msra.mxu3 %v18_v0  ;;  %v15_v3 = vld [vmem:[%s137_s1] sm:$0xff]  ;;  %v13_v4 = vld [vmem:[%s138_s0 + $0x10] sm:$0xff]  ;;  %v14_v5 = vld [vmem:[%s138_s0 + $0x18] sm:$0xff] }
   0x3   :  { %44 = vmatpush.msra.mxu0 %v18_v0  ;;  %74 = vmatpush.msra.mxu1 %v18_v0  ;;  %v11_v6 = vld [vmem:[%s138_s0] sm:$0xff]  ;;  %v12_v7 = vld [vmem:[%s138_s0 + $0x8] sm:$0xff] }
   0x4   :  { %78 = vmatpush.msra.mxu2 %v17_v1  ;;  %79 = vmatpush.msra.mxu3 %v17_v1 }
   0x5   :  { %45 = vmatpush.msra.mxu0 %v17_v1  ;;  %77 = vmatpush.msra.mxu1 %v17_v1 }
   0x6   :  { %81 = vmatpush.msra.mxu2 %v16_v2  ;;  %82 = vmatpush.msra.mxu3 %v16_v2 }
   0x7   :  { %46 = vmatpush.msra.mxu0 %v16_v2  ;;  %80 = vmatpush.msra.mxu1 %v16_v2 }
   0x8   :  { %84 = vmatpush.msra.mxu2 %v15_v3  ;;  %85 = vmatpush.msra.mxu3 %v15_v3 }
   0x9   :  { %72 = vmatmul.msk.f32.vlgmr.msra.gmra.mxu2 %vm19_vm0, %v13_v4  ;;  %73 = vmatmul.msk.f32.vlgmr.msra.gmra.mxu3 %vm19_vm0, %v14_v5 }
   0xa   :  { %47 = vmatpush.msra.mxu0 %v15_v3  ;;  %83 = vmatpush.msra.mxu1 %v15_v3 }
   0xb   :  { %70 = vmatmul.msk.f32.vlgmr.msra.gmra.mxu0 %vm19_vm0, %v11_v6  ;;  %71 = vmatmul.msk.f32.vlgmr.msra.gmra.mxu1 %vm19_vm0, %v12_v7 }
  0x88   :  { %v49_v8 = vpop.f32.mrf.mxu0  ;;  %v52_v9 = vpop.f32.mrf.mxu1 }
  0x89   :  { %62 = vst.msk [vmem:[%s139_s2] sm:$0xff] %vm61_vm1, %v49_v8 }
  0x8a   :  { %63 = vst.msk [vmem:[%s139_s2 + $0x8] sm:$0xff] %vm61_vm1, %v52_v9 }
  0x8c   :  { %v55_v10 = vpop.f32.mrf.mxu2  ;;  %v58_v11 = vpop.f32.mrf.mxu3 }
  0x8d   :  { %64 = vst.msk [vmem:[%s139_s2 + $0x10] sm:$0xff] %vm61_vm1, %v55_v10 }
  0x8e   :  { %65 = vst.msk [vmem:[%s139_s2 + $0x18] sm:$0xff] %vm61_vm1, %v58_v11 }

// kernel: seq2seq_decoder_forward.8
= control target key start
LH: loop header
LB: loop body
LE: loop exit
PB: predicated region body
PF: predicated region fallthrough
CT: control target
= control target key end

     0   :  { %vm27_vm0 = vcmask 257024   ;;  %vm38_vm1 = vcmask 261120   ;;  %s890_s3 = inlined_call_operand.vmem [shape: f32[32,96], index: 3, kind: input, shape index: {}]   ;;  %s891_s2 = inlined_call_operand.vmem [shape: f32[4,32], index: 2, kind: input, shape index: {}]   ;;  %s892_s4 = inlined_call_operand.vmem [shape: f32[1,32], index: 4, kind: input, shape index: {}]   ;;  %s893_s0 = inlined_call_operand.vmem [shape: f32[8,4,96], index: 0, kind: input, shape index: {}]   ;;  %s894_s1 = inlined_call_operand.vmem [shape: f32[4,96], index: 1, kind: input, shape index: {}]   ;;  %s895_s5 = inlined_call_operand.vmem [shape: f32[8,4,32], index: 5, kind: output, shape index: {0}]   ;;  %s896_s6 = inlined_call_operand.vmem [shape: f32[4,32], index: 6, kind: output, shape index: {1}]  }
   0x1   :  { %v32_v0 = vld [vmem:[%s890_s3 + $0x18] sm:$0xff]  ;;  %v31_v1 = vld [vmem:[%s890_s3 + $0x10] sm:$0xff]  ;;  %v26_v2 = vld [vmem:[%s891_s2] sm:$0xf]  ;;  %s708_s2 = smov 64  }
   0x2   :  { %54 = vmatpush.msra.mxu0 %v32_v0  ;;  %133 = vmatpush.msra.mxu1 %v32_v0  ;;  %v30_v3 = vld [vmem:[%s890_s3 + $0x8] sm:$0xff]  ;;  %28 = vst.msk [vmem:[#allocation2] sm:$0xf] %vm27_vm0, %v26_v2  ;;  %v659_v4 = vld [vmem:[%s892_s4] ss:$0 sm:$0xff]  ;;  %s709_s4 = smov 32  }
   0x3   :  { %204 = vmatpush.msra.mxu2 %v32_v0  ;;  %275 = vmatpush.msra.mxu3 %v32_v0  ;;  %v29_v5 = vld [vmem:[%s890_s3] sm:$0xff] }
   0x4   :  { %55 = vmatpush.msra.mxu0 %v31_v1  ;;  %134 = vmatpush.msra.mxu1 %v31_v1  ;;  %v774_v10 = vld [vmem:[%s894_s1] sm:$0xf]  ;;  %s710_s1 = smov 96   ;;  %v628_v41 = vld [vmem:[%s893_s0 + $0x4] sm:$0xf] }
   0x5   :  { %84 = vrot.lane.b32.xlu0 %v659_v4, %s708_s2  ;;  %205 = vmatpush.msra.mxu2 %v31_v1  ;;  %v36_v11 = vld [vmem:[%s893_s0] sm:$0xf]  ;;  %v118_v42 = vadd.f32 %v628_v41, %v774_v10 }
   0x6   :  { %56 = vmatpush.msra.mxu0 %v30_v3  ;;  %135 = vmatpush.msra.mxu1 %v30_v3  ;;  %v37_v12 = vadd.f32 %v36_v11, %v774_v10 }
   0x7   :  { %206 = vmatpush.msra.mxu2 %v30_v3  ;;  %276 = vmatpush.msra.mxu3 %v31_v1 }
   0x8   :  { %57 = vmatpush.msra.mxu0 %v29_v5  ;;  %136 = vmatpush.msra.mxu1 %v29_v5 }
   0x9   :  { %207 = vmatpush.msra.mxu2 %v29_v5  ;;  %277 = vmatpush.msra.mxu3 %v30_v3  ;;  %v35_v6 = vld [vmem:[#allocation2] sm:$0xf] }
   0xa   :  { %346 = vmatpush.msrb.mxu0 %v32_v0  ;;  %417 = vmatpush.msrb.mxu1 %v32_v0 }
   0xb   :  { %626 = vmatmul.msk.f32.vlgmr.msra.gmra.mxu0 %vm38_vm1, %v35_v6  ;;  %105 = vrot.lane.b32.xlu2 %v35_v6, %s709_s4  ;;  %v632_v6 = vld [vmem:[%s893_s0 + $0x8] sm:$0xf] }
   0xc   :  { %278 = vmatpush.msra.mxu3 %v29_v5  ;;  %347 = vmatpush.msrb.mxu0 %v31_v1 }
   0xd   :  { %418 = vmatpush.msrb.mxu1 %v31_v1  ;;  %488 = vmatpush.msrb.mxu2 %v32_v0 }
   0xe   :  { %348 = vmatpush.msrb.mxu0 %v30_v3  ;;  %559 = vmatpush.msrb.mxu3 %v32_v0 }
   0xf   :  { %419 = vmatpush.msrb.mxu1 %v30_v3  ;;  %489 = vmatpush.msrb.mxu2 %v31_v1 }
  0x10   :  { %349 = vmatpush.msrb.mxu0 %v29_v5  ;;  %560 = vmatpush.msrb.mxu3 %v31_v1 }
  0x11   :  { %420 = vmatpush.msrb.mxu1 %v29_v5  ;;  %490 = vmatpush.msrb.mxu2 %v30_v3 }
  0x12   :  { %561 = vmatpush.msrb.mxu3 %v30_v3 }
  0x13   :  { %491 = vmatpush.msrb.mxu2 %v29_v5 }
  0x14   :  { %562 = vmatpush.msrb.mxu3 %v29_v5 }
  0x65   :  { %v106_v32 = vpop.permute.xlu2 %105 }
  0x77   :  { %v767_v7 = vpop.permute.xlu0 %84 }
  0x88   :  { %v59_v8 = vpop.f32.mrf.mxu0 }
  0x89   :  { %v87_v9 = vadd.f32 %v767_v7, %v59_v8  ;;  %v62_v13 = vadd.f32 %v59_v8, %v37_v12  ;;  %v189_v8 = vadd.f32 %v632_v6, %v774_v10 }
  0x8b   :  { %89 = vrot.lane.b32.xlu0 %v87_v9, %s708_s2  ;;  %v627_v14 = vmul.f32 -1.442695, %v62_v13 }
  0x8d   :  { %660 = vpow2.f32 %v627_v14 }
  0x93   :  { %v661_v15 = vpop.eup %660 }
  0x94   :  { %v66_v16 = vadd.f32 1.0, %v661_v15 }
  0x96   :  { %662 = vrcp.f32 %v66_v16  ;;  %v78_v22 = vand.u32 2147483648, %v66_v16  ;;  %vm72_vm3 = vweird.f32 %v66_v16  ;;  %v76_v23 = vand.u32 2147483647, %v66_v16 }
  0x98   :  { %v79_v25 = vor.u32 1.1754944e-38, %v78_v22  ;;  %vm77_vm5 = vcmp.eq.f32.partialorder %v76_v23, 8.507059e+37 }
  0x9c   :  { %v663_v17 = vpop.eup %662 }
  0x9d   :  { %v68_v18 = vmul.f32 %v663_v17, %v66_v16  ;;  %vm73_vm2 = vweird.f32 %v663_v17 }
  0x9e   :  { %vm74_vm4 = vmor %vm72_vm3, %vm73_vm2 }
  0x9f   :  { %v69_v19 = vsub.f32 1.0, %v68_v18 }
  0xa1   :  { %v70_v20 = vmul.f32 %v663_v17, %v69_v19 }
  0xa3   :  { %v71_v21 = vadd.f32 %v663_v17, %v70_v20 }
  0xa5   :  { %v75_v24 = vsel %vm74_vm4, %v663_v17, %v71_v21 }
  0xa6   :  { %v80_v26 = vsel %vm77_vm5, %v79_v25, %v75_v24 }
  0xa7   :  { %v99_v33 = vsub.f32 1.0, %v80_v26  ;;  %v108_v35 = vmul.f32 %v106_v32, %v80_v26 }
  0xfd   :  { %v90_v27 = vpop.permute.xlu0 %89 }
  0xfe   :  { %v92_v28 = vmul.f32 %v90_v27, %v80_v26 }
 0x100   :  { %94 = vrot.lane.b32.xlu1 %v92_v28, %s708_s2 }
 0x172   :  { %v95_v29 = vpop.permute.xlu1 %94 }
 0x173   :  { %v97_v30 = vadd.f32 %v95_v29, %v37_v12 }
 0x175   :  { %664 = vtanh.f32 %v97_v30 }
 0x17b   :  { %v665_v31 = vpop.eup %664 }
 0x17c   :  { %101 = vrot.lane.b32.xlu1 %v665_v31, %s710_s1 }
 0x1ee   :  { %v102_v34 = vpop.permute.xlu1 %101 }
 0x1ef   :  { %v104_v36 = vmul.f32 %v102_v34, %v99_v33 }
 0x1f1   :  { %v109_v37 = vadd.f32 %v108_v35, %v104_v36 }
 0x1f3   :  { %111 = vrot.lane.b32.xlu2 %v109_v37, %s710_s1 }
 0x24d   :  { %v112_v38 = vpop.permute.xlu2 %111 }
 0x24e   :  { %115 = vst.msk [vmem:[%s895_s5] sm:$0xf] %vm27_vm0, %v112_v38  ;;  %629 = vmatmul.msk.f32.vlgmr.msra.gmra.mxu1 %vm38_vm1, %v112_v38 }
 0x2cb   :  { %v138_v39 = vpop.f32.mrf.mxu1 }
 0x2cc   :  { %v161_v40 = vadd.f32 %v138_v39, %v767_v7  ;;  %v141_v43 = vadd.f32 %v138_v39, %v118_v42 }
 0x2ce   :  { %163 = vrot.lane.b32.xlu0 %v161_v40, %s708_s2  ;;  %v630_v44 = vmul.f32 -1.442695, %v141_v43 }
 0x2d0   :  { %666 = vpow2.f32 %v630_v44 }
 0x2d6   :  { %v667_v45 = vpop.eup %666 }
 0x2d7   :  { %v145_v46 = vadd.f32 1.0, %v667_v45 }
 0x2d9   :  { %668 = vrcp.f32 %v145_v46  ;;  %v157_v52 = vand.u32 2147483648, %v145_v46  ;;  %vm151_vm7 = vweird.f32 %v145_v46  ;;  %v155_v53 = vand.u32 2147483647, %v145_v46 }
 0x2db   :  { %v158_v55 = vor.u32 1.1754944e-38, %v157_v52  ;;  %vm156_vm9 = vcmp.eq.f32.partialorder %v155_v53, 8.507059e+37 }
 0x2df   :  { %v669_v47 = vpop.eup %668 }
 0x2e0   :  { %v147_v48 = vmul.f32 %v669_v47, %v145_v46  ;;  %vm152_vm6 = vweird.f32 %v669_v47 }
 0x2e1   :  { %vm153_vm8 = vmor %vm151_vm7, %vm152_vm6 }
 0x2e2   :  { %v148_v49 = vsub.f32 1.0, %v147_v48 }
 0x2e4   :  { %v149_v50 = vmul.f32 %v669_v47, %v148_v49 }
 0x2e6   :  { %v150_v51 = vadd.f32 %v669_v47, %v149_v50 }
 0x2e8   :  { %v154_v54 = vsel %vm153_vm8, %v669_v47, %v150_v51 }
 0x2e9   :  { %v159_v57 = vsel %vm156_vm9, %v158_v55, %v154_v54 }
 0x2ea   :  { %v173_v62 = vsub.f32 1.0, %v159_v57  ;;  %v179_v0 = vmul.f32 %v159_v57, %v109_v37  ;;  %v636_v37 = vld [vmem:[%s893_s0 + $0xc] sm:$0xf] }
 0x2eb   :  { %v260_v38 = vadd.f32 %v636_v37, %v774_v10 }
 0x340   :  { %v164_v56 = vpop.permute.xlu0 %163 }
 0x341   :  { %v166_v58 = vmul.f32 %v164_v56, %v159_v57 }
 0x343   :  { %168 = vrot.lane.b32.xlu1 %v166_v58, %s708_s2 }
 0x3b5   :  { %v169_v59 = vpop.permute.xlu1 %168 }
 0x3b6   :  { %v171_v60 = vadd.f32 %v169_v59, %v118_v42 }
 0x3b8   :  { %670 = vtanh.f32 %v171_v60 }
 0x3be   :  { %v671_v61 = vpop.eup %670 }
 0x3bf   :  { %175 = vrot.lane.b32.xlu2 %v671_v61, %s710_s1 }
 0x419   :  { %v176_v63 = vpop.permute.xlu2 %175 }
 0x41a   :  { %v178_v1 = vmul.f32 %v176_v63, %v173_v62 }
 0x41c   :  { %v180_v2 = vadd.f32 %v179_v0, %v178_v1 }
 0x41e   :  { %182 = vrot.lane.b32.xlu0 %v180_v2, %s710_s1 }
 0x490   :  { %v183_v3 = vpop.permute.xlu0 %182 }
 0x491   :  { %631 = vst.msk [vmem:[%s895_s5 + $0x4] sm:$0xf] %vm27_vm0, %v183_v3  ;;  %633 = vmatmul.msk.f32.vlgmr.msra.gmra.mxu2 %vm38_vm1, %v183_v3 }
 0x514   :  { %v209_v4 = vpop.f32.mrf.mxu2 }
 0x515   :  { %v232_v5 = vadd.f32 %v209_v4, %v767_v7  ;;  %v212_v9 = vadd.f32 %v209_v4, %v189_v8 }
 0x517   :  { %234 = vrot.lane.b32.xlu1 %v232_v5, %s708_s2  ;;  %v634_v11 = vmul.f32 -1.442695, %v212_v9 }
 0x519   :  { %672 = vpow2.f32 %v634_v11 }
 0x51f   :  { %v673_v12 = vpop.eup %672 }
 0x520   :  { %v216_v13 = vadd.f32 1.0, %v673_v12 }
 0x522   :  { %674 = vrcp.f32 %v216_v13  ;;  %v228_v19 = vand.u32 2147483648, %v216_v13  ;;  %vm222_vm11 = vweird.f32 %v216_v13  ;;  %v226_v20 = vand.u32 2147483647, %v216_v13 }
 0x524   :  { %v229_v22 = vor.u32 1.1754944e-38, %v228_v19  ;;  %vm227_vm13 = vcmp.eq.f32.partialorder %v226_v20, 8.507059e+37 }
 0x528   :  { %v675_v14 = vpop.eup %674 }
 0x529   :  { %v218_v15 = vmul.f32 %v675_v14, %v216_v13  ;;  %vm223_vm10 = vweird.f32 %v675_v14 }
 0x52a   :  { %vm224_vm12 = vmor %vm222_vm11, %vm223_vm10 }
 0x52b   :  { %v219_v16 = vsub.f32 1.0, %v218_v15 }
 0x52d   :  { %v220_v17 = vmul.f32 %v675_v14, %v219_v16 }
 0x52f   :  { %v221_v18 = vadd.f32 %v675_v14, %v220_v17 }
 0x531   :  { %v225_v21 = vsel %vm224_vm12, %v675_v14, %v221_v18 }
 0x532   :  { %v230_v24 = vsel %vm227_vm13, %v229_v22, %v225_v21 }
 0x533   :  { %v244_v29 = vsub.f32 1.0, %v230_v24  ;;  %v250_v31 = vmul.f32 %v230_v24, %v180_v2  ;;  %v640_v2 = vld [vmem:[%s893_s0 + $0x10] sm:$0xf] }
 0x534   :  { %v331_v3 = vadd.f32 %v640_v2, %v774_v10 }
 0x589   :  { %v235_v23 = vpop.permute.xlu1 %234 }
 0x58a   :  { %v237_v25 = vmul.f32 %v235_v23, %v230_v24 }
 0x58c   :  { %239 = vrot.lane.b32.xlu2 %v237_v25, %s708_s2 }
 0x5e6   :  { %v240_v26 = vpop.permute.xlu2 %239 }
 0x5e7   :  { %v242_v27 = vadd.f32 %v240_v26, %v189_v8 }
 0x5e9   :  { %676 = vtanh.f32 %v242_v27 }
 0x5ef   :  { %v677_v28 = vpop.eup %676 }
 0x5f0   :  { %246 = vrot.lane.b32.xlu0 %v677_v28, %s710_s1 }
 0x662   :  { %v247_v30 = vpop.permute.xlu0 %246 }
 0x663   :  { %v249_v32 = vmul.f32 %v247_v30, %v244_v29 }
 0x665   :  { %v251_v33 = vadd.f32 %v250_v31, %v249_v32 }
 0x667   :  { %253 = vrot.lane.b32.xlu1 %v251_v33, %s710_s1 }
 0x6d9   :  { %v254_v34 = vpop.permute.xlu1 %253 }
 0x6da   :  { %635 = vst.msk [vmem:[%s895_s5 + $0x8] sm:$0xf] %vm27_vm0, %v254_v34  ;;  %637 = vmatmul.msk.f32.vlgmr.msra.gmra.mxu3 %vm38_vm1, %v254_v34 }
 0x75d   :  { %v280_v35 = vpop.f32.mrf.mxu3 }
 0x75e   :  { %v303_v36 = vadd.f32 %v280_v35, %v767_v7  ;;  %v283_v39 = vadd.f32 %v280_v35, %v260_v38 }
 0x760   :  { %305 = vrot.lane.b32.xlu2 %v303_v36, %s708_s2  ;;  %v638_v40 = vmul.f32 -1.442695, %v283_v39 }
 0x762   :  { %678 = vpow2.f32 %v638_v40 }
 0x768   :  { %v679_v41 = vpop.eup %678 }
 0x769   :  { %v287_v42 = vadd.f32 1.0, %v679_v41 }
 0x76b   :  { %680 = vrcp.f32 %v287_v42  ;;  %v299_v48 = vand.u32 2147483648, %v287_v42  ;;  %vm293_vm15 = vweird.f32 %v287_v42  ;;  %v297_v49 = vand.u32 2147483647, %v287_v42 }
 0x76d   :  { %v300_v51 = vor.u32 1.1754944e-38, %v299_v48  ;;  %vm298_vm3 = vcmp.eq.f32.partialorder %v297_v49, 8.507059e+37 }
 0x771   :  { %v681_v43 = vpop.eup %680 }
 0x772   :  { %v289_v44 = vmul.f32 %v681_v43, %v287_v42  ;;  %vm294_vm14 = vweird.f32 %v681_v43 }
 0x773   :  { %vm295_vm2 = vmor %vm293_vm15, %vm294_vm14 }
 0x774   :  { %v290_v45 = vsub.f32 1.0, %v289_v44 }
 0x776   :  { %v291_v46 = vmul.f32 %v681_v43, %v290_v45 }
 0x778   :  { %v292_v47 = vadd.f32 %v681_v43, %v291_v46 }
 0x77a   :  { %v296_v50 = vsel %vm295_vm2, %v681_v43, %v292_v47 }
 0x77b   :  { %v301_v53 = vsel %vm298_vm3, %v300_v51, %v296_v50 }
 0x77c   :  { %v315_v58 = vsub.f32 1.0, %v301_v53  ;;  %v321_v60 = vmul.f32 %v301_v53, %v251_v33  ;;  %v644_v33 = vld [vmem:[%s893_s0 + $0x14] sm:$0xf] }
 0x77d   :  { %v402_v34 = vadd.f32 %v644_v33, %v774_v10 }
 0x7ba   :  { %v306_v52 = vpop.permute.xlu2 %305 }
 0x7bb   :  { %v308_v54 = vmul.f32 %v306_v52, %v301_v53 }
 0x7bd   :  { %310 = vrot.lane.b32.xlu0 %v308_v54, %s708_s2 }
 0x82f   :  { %v311_v55 = vpop.permute.xlu0 %310 }
 0x830   :  { %v313_v56 = vadd.f32 %v311_v55, %v260_v38 }
 0x832   :  { %682 = vtanh.f32 %v313_v56 }
 0x838   :  { %v683_v57 = vpop.eup %682 }
 0x839   :  { %317 = vrot.lane.b32.xlu1 %v683_v57, %s710_s1 }
 0x8ab   :  { %v318_v59 = vpop.permute.xlu1 %317 }
 0x8ac   :  { %v320_v61 = vmul.f32 %v318_v59, %v315_v58 }
 0x8ae   :  { %v322_v62 = vadd.f32 %v321_v60, %v320_v61 }
 0x8b0   :  { %324 = vrot.lane.b32.xlu2 %v322_v62, %s710_s1 }
 0x90a   :  { %v325_v63 = vpop.permute.xlu2 %324 }
 0x90b   :  { %639 = vst.msk [vmem:[%s895_s5 + $0xc] sm:$0xf] %vm27_vm0, %v325_v63  ;;  %641 = vmatmul.msk.f32.vlgmr.msrb.gmra.mxu0 %vm38_vm1, %v325_v63 }
 0x988   :  { %v351_v0 = vpop.f32.mrf.mxu0 }
 0x989   :  { %v374_v1 = vadd.f32 %v351_v0, %v767_v7  ;;  %v354_v4 = vadd.f32 %v351_v0, %v331_v3 }
 0x98b   :  { %376 = vrot.lane.b32.xlu0 %v374_v1, %s708_s2  ;;  %v642_v5 = vmul.f32 -1.442695, %v354_v4 }
 0x98d   :  { %684 = vpow2.f32 %v642_v5 }
 0x993   :  { %v685_v6 = vpop.eup %684 }
 0x994   :  { %v358_v8 = vadd.f32 1.0, %v685_v6 }
 0x996   :  { %686 = vrcp.f32 %v358_v8  ;;  %v370_v15 = vand.u32 2147483648, %v358_v8  ;;  %vm364_vm5 = vweird.f32 %v358_v8  ;;  %v368_v16 = vand.u32 2147483647, %v358_v8 }
 0x998   :  { %v371_v18 = vor.u32 1.1754944e-38, %v370_v15  ;;  %vm369_vm7 = vcmp.eq.f32.partialorder %v368_v16, 8.507059e+37 }
 0x99c   :  { %v687_v9 = vpop.eup %686 }
 0x99d   :  { %v360_v11 = vmul.f32 %v687_v9, %v358_v8  ;;  %vm365_vm4 = vweird.f32 %v687_v9 }
 0x99e   :  { %vm366_vm6 = vmor %vm364_vm5, %vm365_vm4 }
 0x99f   :  { %v361_v12 = vsub.f32 1.0, %v360_v11 }
 0x9a1   :  { %v362_v13 = vmul.f32 %v687_v9, %v361_v12 }
 0x9a3   :  { %v363_v14 = vadd.f32 %v687_v9, %v362_v13 }
 0x9a5   :  { %v367_v17 = vsel %vm366_vm6, %v687_v9, %v363_v14 }
 0x9a6   :  { %v372_v20 = vsel %vm369_vm7, %v371_v18, %v367_v17 }
 0x9a7   :  { %v386_v25 = vsub.f32 1.0, %v372_v20  ;;  %v392_v27 = vmul.f32 %v372_v20, %v322_v62  ;;  %v648_v62 = vld [vmem:[%s893_s0 + $0x18] sm:$0xf] }
 0x9a8   :  { %v473_v63 = vadd.f32 %v648_v62, %v774_v10 }
 0x9fd   :  { %v377_v19 = vpop.permute.xlu0 %376 }
 0x9fe   :  { %v379_v21 = vmul.f32 %v377_v19, %v372_v20 }
 0xa00   :  { %381 = vrot.lane.b32.xlu1 %v379_v21, %s708_s2 }
 0xa72   :  { %v382_v22 = vpop.permute.xlu1 %381 }
 0xa73   :  { %v384_v23 = vadd.f32 %v382_v22, %v331_v3 }
 0xa75   :  { %688 = vtanh.f32 %v384_v23 }
 0xa7b   :  { %v689_v24 = vpop.eup %688 }
 0xa7c   :  { %388 = vrot.lane.b32.xlu2 %v689_v24, %s710_s1 }
 0xad6   :  { %v389_v26 = vpop.permute.xlu2 %388 }
 0xad7   :  { %v391_v28 = vmul.f32 %v389_v26, %v386_v25 }
 0xad9   :  { %v393_v29 = vadd.f32 %v392_v27, %v391_v28 }
 0xadb   :  { %395 = vrot.lane.b32.xlu0 %v393_v29, %s710_s1 }
 0xb4d   :  { %v396_v30 = vpop.permute.xlu0 %395 }
 0xb4e   :  { %643 = vst.msk [vmem:[%s895_s5 + $0x10] sm:$0xf] %vm27_vm0, %v396_v30  ;;  %645 = vmatmul.msk.f32.vlgmr.msrb.gmra.mxu1 %vm38_vm1, %v396_v30 }
 0xbcb   :  { %v422_v31 = vpop.f32.mrf.mxu1 }
 0xbcc   :  { %v445_v32 = vadd.f32 %v422_v31, %v767_v7  ;;  %v425_v35 = vadd.f32 %v422_v31, %v402_v34 }
 0xbce   :  { %447 = vrot.lane.b32.xlu1 %v445_v32, %s708_s2  ;;  %v646_v36 = vmul.f32 -1.442695, %v425_v35 }
 0xbd0   :  { %690 = vpow2.f32 %v646_v36 }
 0xbd6   :  { %v691_v37 = vpop.eup %690 }
 0xbd7   :  { %v429_v38 = vadd.f32 1.0, %v691_v37 }
 0xbd9   :  { %692 = vrcp.f32 %v429_v38  ;;  %v441_v44 = vand.u32 2147483648, %v429_v38  ;;  %vm435_vm9 = vweird.f32 %v429_v38  ;;  %v439_v45 = vand.u32 2147483647, %v429_v38 }
 0xbdb   :  { %v442_v47 = vor.u32 1.1754944e-38, %v441_v44  ;;  %vm440_vm11 = vcmp.eq.f32.partialorder %v439_v45, 8.507059e+37 }
 0xbdf   :  { %v693_v39 = vpop.eup %692 }
 0xbe0   :  { %v431_v40 = vmul.f32 %v693_v39, %v429_v38  ;;  %vm436_vm8 = vweird.f32 %v693_v39 }
 0xbe1   :  { %vm437_vm10 = vmor %vm435_vm9, %vm436_vm8 }
 0xbe2   :  { %v432_v41 = vsub.f32 1.0, %v431_v40 }
 0xbe4   :  { %v433_v42 = vmul.f32 %v693_v39, %v432_v41 }
 0xbe6   :  { %v434_v43 = vadd.f32 %v693_v39, %v433_v42 }
 0xbe8   :  { %v438_v46 = vsel %vm437_vm10, %v693_v39, %v434_v43 }
 0xbe9   :  { %v443_v49 = vsel %vm440_vm11, %v442_v47, %v438_v46 }
 0xbea   :  { %v457_v54 = vsub.f32 1.0, %v443_v49  ;;  %v463_v56 = vmul.f32 %v443_v49, %v393_v29  ;;  %v652_v29 = vld [vmem:[%s893_s0 + $0x1c] sm:$0xf] }
 0xbeb   :  { %v544_v30 = vadd.f32 %v652_v29, %v774_v10 }
 0xc40   :  { %v448_v48 = vpop.permute.xlu1 %447 }
 0xc41   :  { %v450_v50 = vmul.f32 %v448_v48, %v443_v49 }
 0xc43   :  { %452 = vrot.lane.b32.xlu2 %v450_v50, %s708_s2 }
 0xc9d   :  { %v453_v51 = vpop.permute.xlu2 %452 }
 0xc9e   :  { %v455_v52 = vadd.f32 %v453_v51, %v402_v34 }
 0xca0   :  { %694 = vtanh.f32 %v455_v52 }
 0xca6   :  { %v695_v53 = vpop.eup %694 }
 0xca7   :  { %459 = vrot.lane.b32.xlu0 %v695_v53, %s710_s1 }
 0xd19   :  { %v460_v55 = vpop.permute.xlu0 %459 }
 0xd1a   :  { %v462_v57 = vmul.f32 %v460_v55, %v457_v54 }
 0xd1c   :  { %v464_v58 = vadd.f32 %v463_v56, %v462_v57 }
 0xd1e   :  { %466 = vrot.lane.b32.xlu1 %v464_v58, %s710_s1 }
 0xd90   :  { %v467_v59 = vpop.permute.xlu1 %466 }
 0xd91   :  { %647 = vst.msk [vmem:[%s895_s5 + $0x14] sm:$0xf] %vm27_vm0, %v467_v59  ;;  %649 = vmatmul.msk.f32.vlgmr.msrb.gmra.mxu2 %vm38_vm1, %v467_v59 }
 0xe14   :  { %v493_v60 = vpop.f32.mrf.mxu2 }
 0xe15   :  { %v516_v61 = vadd.f32 %v493_v60, %v767_v7  ;;  %v496_v0 = vadd.f32 %v493_v60, %v473_v63 }
 0xe17   :  { %518 = vrot.lane.b32.xlu2 %v516_v61, %s708_s2  ;;  %v650_v1 = vmul.f32 -1.442695, %v496_v0 }
 0xe19   :  { %696 = vpow2.f32 %v650_v1 }
 0xe1f   :  { %v697_v2 = vpop.eup %696 }
 0xe20   :  { %v500_v3 = vadd.f32 1.0, %v697_v2 }
 0xe22   :  { %698 = vrcp.f32 %v500_v3  ;;  %v512_v11 = vand.u32 2147483648, %v500_v3  ;;  %vm506_vm13 = vweird.f32 %v500_v3  ;;  %v510_v12 = vand.u32 2147483647, %v500_v3 }
 0xe24   :  { %v513_v14 = vor.u32 1.1754944e-38, %v512_v11  ;;  %vm511_vm15 = vcmp.eq.f32.partialorder %v510_v12, 8.507059e+37 }
 0xe28   :  { %v699_v4 = vpop.eup %698 }
 0xe29   :  { %v502_v5 = vmul.f32 %v699_v4, %v500_v3  ;;  %vm507_vm12 = vweird.f32 %v699_v4 }
 0xe2a   :  { %vm508_vm14 = vmor %vm506_vm13, %vm507_vm12 }
 0xe2b   :  { %v503_v6 = vsub.f32 1.0, %v502_v5 }
 0xe2d   :  { %v504_v8 = vmul.f32 %v699_v4, %v503_v6 }
 0xe2f   :  { %v505_v9 = vadd.f32 %v699_v4, %v504_v8 }
 0xe31   :  { %v509_v13 = vsel %vm508_vm14, %v699_v4, %v505_v9 }
 0xe32   :  { %v514_v16 = vsel %vm511_vm15, %v513_v14, %v509_v13 }
 0xe33   :  { %v528_v21 = vsub.f32 1.0, %v514_v16  ;;  %v534_v23 = vmul.f32 %v514_v16, %v464_v58 }
 0xe71   :  { %v519_v15 = vpop.permute.xlu2 %518 }
 0xe72   :  { %v521_v17 = vmul.f32 %v519_v15, %v514_v16 }
 0xe74   :  { %523 = vrot.lane.b32.xlu0 %v521_v17, %s708_s2 }
 0xee6   :  { %v524_v18 = vpop.permute.xlu0 %523 }
 0xee7   :  { %v526_v19 = vadd.f32 %v524_v18, %v473_v63 }
 0xee9   :  { %700 = vtanh.f32 %v526_v19 }
 0xeef   :  { %v701_v20 = vpop.eup %700 }
 0xef0   :  { %530 = vrot.lane.b32.xlu1 %v701_v20, %s710_s1 }
 0xf62   :  { %v531_v22 = vpop.permute.xlu1 %530 }
 0xf63   :  { %v533_v24 = vmul.f32 %v531_v22, %v528_v21 }
 0xf65   :  { %v535_v25 = vadd.f32 %v534_v23, %v533_v24 }
 0xf67   :  { %537 = vrot.lane.b32.xlu2 %v535_v25, %s710_s1 }
 0xfc1   :  { %v538_v26 = vpop.permute.xlu2 %537 }
 0xfc2   :  { %651 = vst.msk [vmem:[%s895_s5 + $0x18] sm:$0xf] %vm27_vm0, %v538_v26  ;;  %653 = vmatmul.msk.f32.vlgmr.msrb.gmra.mxu3 %vm38_vm1, %v538_v26 }
0x1045   :  { %v564_v27 = vpop.f32.mrf.mxu3 }
0x1046   :  { %v587_v28 = vadd.f32 %v564_v27, %v767_v7  ;;  %v567_v31 = vadd.f32 %v564_v27, %v544_v30 }
0x1048   :  { %589 = vrot.lane.b32.xlu0 %v587_v28, %s708_s2  ;;  %v654_v32 = vmul.f32 -1.442695, %v567_v31 }
0x104a   :  { %702 = vpow2.f32 %v654_v32 }
0x1050   :  { %v703_v33 = vpop.eup %702 }
0x1051   :  { %v571_v34 = vadd.f32 1.0, %v703_v33 }
0x1053   :  { %704 = vrcp.f32 %v571_v34  ;;  %v583_v7 = vand.u32 2147483648, %v571_v34  ;;  %vm577_vm2 = vweird.f32 %v571_v34  ;;  %v581_v40 = vand.u32 2147483647, %v571_v34 }
0x1055   :  { %v584_v42 = vor.u32 1.1754944e-38, %v583_v7  ;;  %vm582_vm4 = vcmp.eq.f32.partialorder %v581_v40, 8.507059e+37 }
0x1059   :  { %v705_v35 = vpop.eup %704 }
0x105a   :  { %v573_v36 = vmul.f32 %v705_v35, %v571_v34  ;;  %vm578_vm1 = vweird.f32 %v705_v35 }
0x105b   :  { %vm579_vm3 = vmor %vm577_vm2, %vm578_vm1 }
0x105c   :  { %v574_v37 = vsub.f32 1.0, %v573_v36 }
0x105e   :  { %v575_v38 = vmul.f32 %v705_v35, %v574_v37 }
0x1060   :  { %v576_v39 = vadd.f32 %v705_v35, %v575_v38 }
0x1062   :  { %v580_v41 = vsel %vm579_vm3, %v705_v35, %v576_v39 }
0x1063   :  { %v585_v43 = vsel %vm582_vm4, %v584_v42, %v580_v41 }
0x1064   :  { %v599_v48 = vsub.f32 1.0, %v585_v43  ;;  %v605_v50 = vmul.f32 %v585_v43, %v535_v25 }
0x10ba   :  { %v590_v10 = vpop.permute.xlu0 %589 }
0x10bb   :  { %v592_v44 = vmul.f32 %v590_v10, %v585_v43 }
0x10bd   :  { %594 = vrot.lane.b32.xlu1 %v592_v44, %s708_s2 }
0x112f   :  { %v595_v45 = vpop.permute.xlu1 %594 }
0x1130   :  { %v597_v46 = vadd.f32 %v595_v45, %v544_v30 }
0x1132   :  { %706 = vtanh.f32 %v597_v46 }
0x1138   :  { %v707_v47 = vpop.eup %706 }
0x1139   :  { %601 = vrot.lane.b32.xlu2 %v707_v47, %s710_s1 }
0x1193   :  { %v602_v49 = vpop.permute.xlu2 %601 }
0x1194   :  { %v604_v51 = vmul.f32 %v602_v49, %v599_v48 }
0x1196   :  { %v606_v52 = vadd.f32 %v605_v50, %v604_v51 }
0x1198   :  { %608 = vrot.lane.b32.xlu0 %v606_v52, %s710_s1 }
0x120a   :  { %v609_v53 = vpop.permute.xlu0 %608 }
0x120b   :  { %655 = vst.msk [vmem:[%s895_s5 + $0x1c] sm:$0xf] %vm27_vm0, %v609_v53 }
0x120c   :  { %613 = vst.msk [vmem:[#allocation2] sm:$0xf] %vm27_vm0, %v609_v53 }
0x120d   :  { %617 = vst.msk [vmem:[%s896_s6] sm:$0xf] %vm27_vm0, %v609_v53 }

// kernel: seq2seq_decoder_forward.11
= control target key start
LH: loop header
LB: loop body
LE: loop exit
PB: predicated region body
PF: predicated region fallthrough
CT: control target
= control target key end

     0   :  { %vm26_vm0 = vcmask 261120   ;;  %s160_s1 = inlined_call_operand.vmem [shape: f32[32,32], index: 1, kind: input, shape index: {}]   ;;  %s161_s2 = inlined_call_operand.vmem [shape: f32[1,32], index: 2, kind: input, shape index: {}]   ;;  %s162_s0 = inlined_call_operand.vmem [shape: f32[32,32], index: 0, kind: input, shape index: {}]   ;;  %s163_s3 = inlined_call_operand.vmem [shape: f32[32,32], index: 3, kind: output, shape index: {}]  }
   0x1   :  { %v21_v0 = vld [vmem:[%s160_s1 + $0x18] sm:$0xff]  ;;  %v20_v1 = vld [vmem:[%s160_s1 + $0x10] sm:$0xff]  ;;  %v19_v2 = vld [vmem:[%s160_s1 + $0x8] sm:$0xff] }
   0x2   :  { %81 = vmatpush.msra.mxu2 %v21_v0  ;;  %82 = vmatpush.msra.mxu3 %v21_v0  ;;  %v18_v3 = vld [vmem:[%s160_s1] sm:$0xff]  ;;  %v16_v4 = vld [vmem:[%s162_s0 + $0x10] sm:$0xff]  ;;  %v17_v5 = vld [vmem:[%s162_s0 + $0x18] sm:$0xff] }
   0x3   :  { %51 = vmatpush.msra.mxu0 %v21_v0  ;;  %80 = vmatpush.msra.mxu1 %v21_v0  ;;  %v14_v6 = vld [vmem:[%s162_s0] sm:$0xff]  ;;  %v15_v7 = vld [vmem:[%s162_s0 + $0x8] sm:$0xff] }
   0x4   :  { %84 = vmatpush.msra.mxu2 %v20_v1  ;;  %85 = vmatpush.msra.mxu3 %v20_v1  ;;  %v92_v8 = vld [vmem:[%s161_s2] ss:$0 sm:$0xff] }
   0x5   :  { %52 = vmatpush.msra.mxu0 %v20_v1  ;;  %83 = vmatpush.msra.mxu1 %v20_v1 }
   0x6   :  { %87 = vmatpush.msra.mxu2 %v19_v2  ;;  %88 = vmatpush.msra.mxu3 %v19_v2 }
   0x7   :  { %53 = vmatpush.msra.mxu0 %v19_v2  ;;  %86 = vmatpush.msra.mxu1 %v19_v2 }
   0x8   :  { %90 = vmatpush.msra.mxu2 %v18_v3  ;;  %91 = vmatpush.msra.mxu3 %v18_v3 }
   0x9   :  { %78 = vmatmul.msk.f32.vlgmr.msra.gmra.mxu2 %vm26_vm0, %v16_v4  ;;  %79 = vmatmul.msk.f32.vlgmr.msra.gmra.mxu3 %vm26_vm0, %v17_v5 }
   0xa   :  { %54 = vmatpush.msra.mxu0 %v18_v3  ;;  %89 = vmatpush.msra.mxu1 %v18_v3 }
   0xb   :  { %76 = vmatmul.msk.f32.vlgmr.msra.gmra.mxu0 %vm26_vm0, %v14_v6  ;;  %77 = vmatmul.msk.f32.vlgmr.msra.gmra.mxu1 %vm26_vm0, %v15_v7 }
  0x88   :  { %v56_v9 = vpop.f32.mrf.mxu0  ;;  %v59_v10 = vpop.f32.mrf.mxu1 }
  0x89   :  { %v57_v11 = vadd.f32 %v92_v8, %v56_v9  ;;  %v60_v12 = vadd.f32 %v92_v8, %v59_v10 }
  0x8b   :  { %68 = vst.msk [vmem:[%s163_s3] sm:$0xff] %vm26_vm0, %v57_v11 }
  0x8c   :  { %69 = vst.msk [vmem:[%s163_s3 + $0x8] sm:$0xff] %vm26_vm0, %v60_v12  ;;  %v62_v13 = vpop.f32.mrf.mxu2  ;;  %v65_v14 = vpop.f32.mrf.mxu3 }
  0x8d   :  { %v63_v15 = vadd.f32 %v92_v8, %v62_v13  ;;  %v66_v16 = vadd.f32 %v92_v8, %v65_v14 }
  0x8f   :  { %70 = vst.msk [vmem:[%s163_s3 + $0x10] sm:$0xff] %vm26_vm0, %v63_v15 }
  0x90   :  { %71 = vst.msk [vmem:[%s163_s3 + $0x18] sm:$0xff] %vm26_vm0, %v66_v16 }

</bundles_post_ra>
